<compile_context>
chip_gen: v6e
topology: v6e:2x2x1
jax: 0.10.0
libtpu: 0.0.40
codegen_flags: <defaults>
</compile_context>

<pallas_src>
import functools

import jax
import jax.numpy as jnp
from jax.experimental import pallas as pl
from jax.experimental.pallas import tpu as pltpu

LANE = 128


def _round_up(v, m):
    return -(-v // m) * m


# ----------------------------------------------------------------------------
# Pallas kernel: the whole forward in one call, everything resident in VMEM.
# ----------------------------------------------------------------------------
def _cheb_tail(L_bf, x_f32, x_bf, theta_at, K, acc):
    """Add sum_{k=1..K-1} T_k @ Theta_k to acc.
    T_0 = x, T_1 = L x, T_k = 2 L T_{k-1} - T_{k-2}.
    L and Theta are bf16, accumulation is f32 on the MXU; the recursion state stays f32 and
    is cast to bf16 once per step (reused for the theta dot and the next L dot).  The 2x is
    folded into the recursion instead of materializing a 2*L slab."""
    if K <= 1:
        return acc
    t_prev = x_f32
    t_cur = jnp.dot(L_bf, x_bf, preferred_element_type=jnp.float32)
    for k in range(1, K):
        t_bf = t_cur.astype(jnp.bfloat16)
        acc = acc + jnp.dot(t_bf, theta_at(k), preferred_element_type=jnp.float32)
        if k + 1 < K:
            t_new = 2.0 * jnp.dot(L_bf, t_bf, preferred_element_type=jnp.float32) - t_prev
            t_prev, t_cur = t_cur, t_new
    return acc


def graph_resnet_kernel(L_ref, x0_ref, th0s_ref, thm_ref, bm_ref, bs_ref,
                        thmix_ref, bmix_ref, out_ref,
                        *, depth, K, K_mix, Fp, inout_skipconn):
    """Fused forward:
       for i in range(depth): x = relu(ChebConv_K(x)) + ChebConv_1(x)   (eval: dropout=id)
       if inout_skipconn:     x = concat([x, x_in], axis=1)
       out = ChebConv_{K_mix}(x)"""
    L_bf = L_ref[...]              # bf16 [Np, Np], resident for the whole forward
    x = x0_ref[...]                # f32 [Np, Fp]; x_in sits in lanes [Fp-nf, Fp) if skipconn

    for i in range(depth):         # static unroll: one launch, L DMA'd once
        x_bf = x.astype(jnp.bfloat16)                       # one cast per layer, reused
        # Fused (main theta_0 | skip theta) slab -> one full-width MXU dot per layer.
        fused = jnp.dot(x_bf, th0s_ref[i], preferred_element_type=jnp.float32)  # [Np, 2Fp]
        main = fused[:, :Fp]
        skip = fused[:, Fp:] + bs_ref[i]
        main = _cheb_tail(L_bf, x, x_bf,
                          lambda k, i=i: thm_ref[i * (K - 1) + (k - 1)], K, main)
        main = main + bm_ref[i]
        # TODO(synk): dropout only applies in training mode; eval forward => identity.
        x = jnp.maximum(main, 0.0) + skip   # hidden lanes [0, nh); rest stays exactly zero

    if inout_skipconn:
        # concat([x, x_in], 1): x_in occupies lanes [Fp-nf, Fp) of x0, the hidden state only
        # lanes [0, nh) (nh + nf <= Fp), so the concat is a plain add (no roll, no extra DMA).
        x = x + x0_ref[...]

    x_bf = x.astype(jnp.bfloat16)
    acc = jnp.dot(x_bf, thmix_ref[0], preferred_element_type=jnp.float32)
    acc = _cheb_tail(L_bf, x, x_bf, lambda k: thmix_ref[k], K_mix, acc)
    out_ref[...] = acc + bmix_ref[...]


# ----------------------------------------------------------------------------
# Graph / parameter setup (plain JAX glue)
# ----------------------------------------------------------------------------
def scaled_laplacian(edge_index, num_nodes):
    """Dense L_tilde used by PyG ChebConv (sym norm, lambda_max = 2, no self loops)."""
    row, col = edge_index[0], edge_index[1]
    A = jnp.zeros((num_nodes, num_nodes), jnp.float32).at[row, col].add(1.0)
    deg = A.sum(axis=1)
    dinv = jnp.where(deg > 0, 1.0 / jnp.sqrt(deg), 0.0)
    return -(dinv[:, None] * A * dinv[None, :])


def init_chebconv(key, K, f_in, f_out):
    scale = jnp.sqrt(2.0 / (f_in * K + f_out)).astype(jnp.float32)   # glorot-style
    theta = jax.random.normal(key, (K, f_in, f_out), jnp.float32) * scale
    bias = jnp.zeros((1, f_out), jnp.float32)                         # PyG: zeros_ init
    return theta, bias


def init_graph_resnet(key, num_features, num_classes, nh, K, K_mix, depth,
                      inout_skipconn=True):
    params = {"blocks": [], "inout_skipconn": inout_skipconn}
    f_in = num_features
    for _ in range(depth):
        key, k_main, k_skip = jax.random.split(key, 3)
        thm, bm = init_chebconv(k_main, K, f_in, nh)        # Kipfblock ChebConv (K)
        ths, bs = init_chebconv(k_skip, 1, f_in, nh)        # skipproject ChebConv (K=1)
        params["blocks"].append((thm, bm, ths, bs))
        f_in = nh
    mix_in = nh + num_features if inout_skipconn else nh
    key, k_mix = jax.random.split(key)
    params["mix"] = init_chebconv(k_mix, K_mix, mix_in, num_classes)
    return params


def _pad_rows_cols_bf16(theta, Fp, row_off=0):
    """[K, fi, fo] f32 -> [K, Fp, Fp] bf16 with input rows placed at [row_off, row_off+fi)."""
    Kt, fi, fo = theta.shape
    out = jnp.zeros((Kt, Fp, Fp), jnp.float32).at[:, row_off:row_off + fi, :fo].set(theta)
    return out.astype(jnp.bfloat16)


def _pad_bias(bias, Fp):
    fo = bias.shape[-1]
    return jnp.zeros((1, Fp), jnp.float32).at[:, :fo].set(bias.reshape(1, fo))


def prepare_fused_params(params, Fp, num_features):
    """Pad/pack all weights into lane-dense bf16 slabs (+ f32 biases)."""
    blocks = params["blocks"]
    inout = params["inout_skipconn"]
    K = blocks[0][0].shape[0]
    nf = num_features
    row0 = (Fp - nf) if inout else 0        # raw-input rows live at the TOP of the slab

    th0s_all, thm_all, bm_all, bs_all = [], [], [], []
    for i, (thm, bm, ths, bs) in enumerate(blocks):
        ro = row0 if i == 0 else 0
        fi, fo = thm.shape[1], thm.shape[2]
        # Fused [Fp, 2*Fp] slab: cols [0, Fp) = main theta_0, cols [Fp, 2Fp) = skip theta.
        slab = jnp.zeros((Fp, 2 * Fp), jnp.float32)
        slab = slab.at[ro:ro + fi, :fo].set(thm[0])
        slab = slab.at[ro:ro + fi, Fp:Fp + ths.shape[2]].set(ths[0])
        th0s_all.append(slab.astype(jnp.bfloat16))
        if K > 1:
            thm_all.append(_pad_rows_cols_bf16(thm[1:], Fp, ro))    # [K-1, Fp, Fp] bf16
        bm_all.append(_pad_bias(bm, Fp))
        bs_all.append(_pad_bias(bs, Fp))

    theta_mix, bias_mix = params["mix"]
    if inout:
        # mix input = concat([hidden, x_in]); hidden rows at [0, nh), x_in rows at [Fp-nf, Fp).
        K_mix, fin_mix, nc = theta_mix.shape
        nh_hidden = fin_mix - nf
        thmix = jnp.zeros((K_mix, Fp, Fp), jnp.float32)
        thmix = thmix.at[:, :nh_hidden, :nc].set(theta_mix[:, :nh_hidden, :])
        thmix = thmix.at[:, Fp - nf:, :nc].set(theta_mix[:, nh_hidden:, :])
        thmix = thmix.astype(jnp.bfloat16)
    else:
        thmix = _pad_rows_cols_bf16(theta_mix, Fp)

    thm_stack = (jnp.concatenate(thm_all, axis=0) if K > 1
                 else jnp.zeros((1, Fp, Fp), jnp.bfloat16))          # dummy, never read
    return (jnp.stack(th0s_all),        # [depth, Fp, 2Fp] bf16
            thm_stack,                  # [depth*(K-1), Fp, Fp] bf16
            jnp.stack(bm_all),          # [depth, 1, Fp] f32
            jnp.stack(bs_all),          # [depth, 1, Fp] f32
            thmix,                      # [K_mix, Fp, Fp] bf16
            _pad_bias(bias_mix, Fp))    # [1, Fp] f32


# ----------------------------------------------------------------------------
# Forward wrapper: one pallas_call for the whole network
# ----------------------------------------------------------------------------
def graph_resnet_forward(params, L, x, num_classes):
    N, nf = x.shape
    blocks = params["blocks"]
    depth = len(blocks)
    K = blocks[0][0].shape[0]
    nh = blocks[-1][0].shape[2]
    K_mix = params["mix"][0].shape[0]
    inout = params["inout_skipconn"]

    feat_dims = [nf, nh, num_classes] + ([nh + nf] if inout else [])
    Fp = _round_up(max(feat_dims), LANE)       # lane-dense feature slab width
    if inout:
        assert nh + nf <= Fp                   # hidden lanes and x_in lanes are disjoint

    # L is bf16 -> native (16, 128) tile; align the contraction dim to the MXU width for
    # large graphs so the dominant L@T matmuls run full systolic passes.
    Np = _round_up(N, 256) if N >= 2048 else _round_up(N, 16)

    # Padded input slab. With the in/out skip connection the raw features go in the TOP nf
    # lanes [Fp-nf, Fp): layer-0 and mix thetas are padded to read those rows, so the final
    # concat([hidden, x_in], 1) is a plain add of the already-resident x0.
    row0 = (Fp - nf) if inout else 0
    x0 = jnp.zeros((Np, Fp), jnp.float32).at[:N, row0:row0 + nf].set(x)

    # bf16 Laplacian (spectrum of L_tilde is in [-1, 1]); matmuls accumulate in f32 on MXU.
    L_bf = jnp.zeros((Np, Np), jnp.float32).at[:N, :N].set(L).astype(jnp.bfloat16)

    th0s, thm_tail, bm_all, bs_all, thmix_p, bmix_p = prepare_fused_params(params, Fp, nf)
    operands = (L_bf, x0, th0s, thm_tail, bm_all, bs_all, thmix_p, bmix_p)

    # Per-generation scoped VMEM limit: ~85% of physical capacity (~108 MiB v5e/v6e,
    # ~54 MiB v7x); the request covers operands + output + the f32 recursion temporaries.
    try:
        vmem_cap = int(pltpu.get_tpu_info().vmem_capacity_bytes)
    except Exception:                      # conservative fallback, valid on all generations
        vmem_cap = 64 * 2 ** 20
    vmem_budget = int(vmem_cap * 0.85)
    operand_bytes = sum(int(a.size) * a.dtype.itemsize for a in operands)
    out_bytes = Np * Fp * 4
    temp_bytes = 8 * Np * Fp * 4           # x, x_bf, fused, t_prev/t_cur/t_new, acc slabs
    work_bytes = operand_bytes + out_bytes + temp_bytes
    vmem_limit = int(min(vmem_budget, max(2 * work_bytes, 32 * 2 ** 20)))
    # TODO(synk): row-tile L behind a grid (pl.Buffered pipeline, "parallel" row axis for the
    #             v7x second TC) once 2*Np^2 bytes exceeds ~60% of vmem_budget.

    n_L = depth * (K - 1) + max(K_mix - 1, 0)
    flops = (2 * Np * Np * Fp * n_L
             + depth * (2 * Np * Fp * (2 * Fp) + (K - 1) * 2 * Np * Fp * Fp)
             + K_mix * 2 * Np * Fp * Fp)
    cost = pl.CostEstimate(flops=int(flops), transcendentals=0,
                           bytes_accessed=int(operand_bytes + out_bytes))

    kernel = functools.partial(graph_resnet_kernel, depth=depth, K=K, K_mix=K_mix,
                               Fp=Fp, inout_skipconn=inout)

    out_pad = pl.pallas_call(
        kernel,
        out_shape=jax.ShapeDtypeStruct((Np, Fp), jnp.float32),
        in_specs=[pl.BlockSpec(memory_space=pltpu.MemorySpace.VMEM)] * len(operands),
        out_specs=pl.BlockSpec(memory_space=pltpu.MemorySpace.VMEM),
        compiler_params=pltpu.CompilerParams(vmem_limit_bytes=vmem_limit),
        cost_estimate=cost,
    )(*operands)

    return out_pad[:N, :num_classes]


# ----------------------------------------------------------------------------
if __name__ == "__main__":
    # Small, module-consistent shapes.
    N = 16               # number of graph nodes
    num_features = 4
    num_classes = 3
    nh = 32
    K = 6
    K_mix = 2
    depth = 3

    key = jax.random.PRNGKey(0)
    k_x, k_p = jax.random.split(key)

    # Node features [N, num_features]
    x = jax.random.normal(k_x, (N, num_features), jnp.float32)

    # Undirected ring graph: edge_index [2, 2N]
    src = jnp.arange(N, dtype=jnp.int32)
    dst = (src + 1) % N
    edge_index = jnp.stack(
        [jnp.concatenate([src, dst]), jnp.concatenate([dst, src])], axis=0
    )

    L_tilde = scaled_laplacian(edge_index, N)
    params = init_graph_resnet(k_p, num_features, num_classes, nh, K, K_mix, depth,
                               inout_skipconn=True)

    out = graph_resnet_forward(params, L_tilde, x, num_classes)
    out = jax.block_until_ready(out)

    assert out.shape == (N, num_classes), out.shape
    assert out.dtype == jnp.float32
    assert bool(jnp.all(jnp.isfinite(out)))
    print("KERNEL_OK")
</pallas_src>

<mosaic_0001>
module attributes {stable_mosaic.version = 11 : i64} {
  func.func @graph_resnet_kernel(%arg0: memref<16x16xbf16, #tpu.memory_space<vmem>>, %arg1: memref<16x128xf32, #tpu.memory_space<vmem>>, %arg2: memref<3x128x256xbf16, #tpu.memory_space<vmem>>, %arg3: memref<15x128x128xbf16, #tpu.memory_space<vmem>>, %arg4: memref<3x1x128xf32, #tpu.memory_space<vmem>>, %arg5: memref<3x1x128xf32, #tpu.memory_space<vmem>>, %arg6: memref<2x128x128xbf16, #tpu.memory_space<vmem>>, %arg7: memref<1x128xf32, #tpu.memory_space<vmem>>, %arg8: memref<16x128xf32, #tpu.memory_space<vmem>>) attributes {dimension_semantics = [], scalar_prefetch = 0 : i64, scratch_operands = 0 : i64, tpu.core_type = #tpu.core_type<tc>} {
    %c0 = arith.constant 0 : index
    %c0_0 = arith.constant 0 : index
    %0 = vector.load %arg0[%c0, %c0_0] : memref<16x16xbf16, #tpu.memory_space<vmem>>, vector<16x16xbf16>
    %c0_1 = arith.constant 0 : index
    %c0_2 = arith.constant 0 : index
    %1 = vector.load %arg1[%c0_1, %c0_2] : memref<16x128xf32, #tpu.memory_space<vmem>>, vector<16x128xf32>
    %2 = arith.truncf %1 : vector<16x128xf32> to vector<16x128xbf16>
    %c0_3 = arith.constant 0 : index
    %c0_4 = arith.constant 0 : index
    %c0_5 = arith.constant 0 : index
    %3 = vector.load %arg2[%c0_3, %c0_4, %c0_5] : memref<3x128x256xbf16, #tpu.memory_space<vmem>>, vector<1x128x256xbf16>
    %4 = vector.shape_cast %3 : vector<1x128x256xbf16> to vector<128x256xbf16>
    %cst = arith.constant dense<0.000000e+00> : vector<16x256xf32>
    %5 = tpu.matmul %2, %4, %cst {dimension_numbers = #tpu.dot_dimension_numbers<[1], [0], [0], [1], [0, 0, 1, 1], [], []>} : vector<16x128xbf16>, vector<128x256xbf16>, vector<16x256xf32> -> vector<16x256xf32>
    %6 = vector.extract_strided_slice %5 {offsets = [0, 0], sizes = [16, 128], strides = [1, 1]} : vector<16x256xf32> to vector<16x128xf32>
    %7 = vector.extract_strided_slice %5 {offsets = [0, 128], sizes = [16, 128], strides = [1, 1]} : vector<16x256xf32> to vector<16x128xf32>
    %c0_6 = arith.constant 0 : index
    %c0_7 = arith.constant 0 : index
    %c0_8 = arith.constant 0 : index
    %8 = vector.load %arg5[%c0_6, %c0_7, %c0_8] : memref<3x1x128xf32, #tpu.memory_space<vmem>>, vector<1x1x128xf32>
    %9 = vector.shape_cast %8 : vector<1x1x128xf32> to vector<1x128xf32>
    %10 = vector.broadcast %9 : vector<1x128xf32> to vector<16x128xf32>
    %11 = arith.addf %7, %10 : vector<16x128xf32>
    %cst_9 = arith.constant dense<0.000000e+00> : vector<16x128xf32>
    %12 = tpu.matmul %0, %2, %cst_9 {dimension_numbers = #tpu.dot_dimension_numbers<[1], [0], [0], [1], [0, 0, 1, 1], [], []>} : vector<16x16xbf16>, vector<16x128xbf16>, vector<16x128xf32> -> vector<16x128xf32>
    %13 = arith.truncf %12 : vector<16x128xf32> to vector<16x128xbf16>
    %c0_10 = arith.constant 0 : index
    %c0_11 = arith.constant 0 : index
    %c0_12 = arith.constant 0 : index
    %14 = vector.load %arg3[%c0_10, %c0_11, %c0_12] : memref<15x128x128xbf16, #tpu.memory_space<vmem>>, vector<1x128x128xbf16>
    %15 = vector.shape_cast %14 : vector<1x128x128xbf16> to vector<128x128xbf16>
    %cst_13 = arith.constant dense<0.000000e+00> : vector<16x128xf32>
    %16 = tpu.matmul %13, %15, %cst_13 {dimension_numbers = #tpu.dot_dimension_numbers<[1], [0], [0], [1], [0, 0, 1, 1], [], []>} : vector<16x128xbf16>, vector<128x128xbf16>, vector<16x128xf32> -> vector<16x128xf32>
    %17 = arith.addf %6, %16 : vector<16x128xf32>
    %cst_14 = arith.constant dense<0.000000e+00> : vector<16x128xf32>
    %18 = tpu.matmul %0, %13, %cst_14 {dimension_numbers = #tpu.dot_dimension_numbers<[1], [0], [0], [1], [0, 0, 1, 1], [], []>} : vector<16x16xbf16>, vector<16x128xbf16>, vector<16x128xf32> -> vector<16x128xf32>
    %cst_15 = arith.constant 2.000000e+00 : f32
    %19 = vector.broadcast %cst_15 : f32 to vector<16x128xf32>
    %20 = arith.mulf %19, %18 : vector<16x128xf32>
    %21 = arith.subf %20, %1 : vector<16x128xf32>
    %22 = arith.truncf %21 : vector<16x128xf32> to vector<16x128xbf16>
    %c1 = arith.constant 1 : index
    %c0_16 = arith.constant 0 : index
    %c0_17 = arith.constant 0 : index
    %23 = vector.load %arg3[%c1, %c0_16, %c0_17] : memref<15x128x128xbf16, #tpu.memory_space<vmem>>, vector<1x128x128xbf16>
    %24 = vector.shape_cast %23 : vector<1x128x128xbf16> to vector<128x128xbf16>
    %cst_18 = arith.constant dense<0.000000e+00> : vector<16x128xf32>
    %25 = tpu.matmul %22, %24, %cst_18 {dimension_numbers = #tpu.dot_dimension_numbers<[1], [0], [0], [1], [0, 0, 1, 1], [], []>} : vector<16x128xbf16>, vector<128x128xbf16>, vector<16x128xf32> -> vector<16x128xf32>
    %26 = arith.addf %17, %25 : vector<16x128xf32>
    %cst_19 = arith.constant dense<0.000000e+00> : vector<16x128xf32>
    %27 = tpu.matmul %0, %22, %cst_19 {dimension_numbers = #tpu.dot_dimension_numbers<[1], [0], [0], [1], [0, 0, 1, 1], [], []>} : vector<16x16xbf16>, vector<16x128xbf16>, vector<16x128xf32> -> vector<16x128xf32>
    %cst_20 = arith.constant 2.000000e+00 : f32
    %28 = vector.broadcast %cst_20 : f32 to vector<16x128xf32>
    %29 = arith.mulf %28, %27 : vector<16x128xf32>
    %30 = arith.subf %29, %12 : vector<16x128xf32>
    %31 = arith.truncf %30 : vector<16x128xf32> to vector<16x128xbf16>
    %c2 = arith.constant 2 : index
    %c0_21 = arith.constant 0 : index
    %c0_22 = arith.constant 0 : index
    %32 = vector.load %arg3[%c2, %c0_21, %c0_22] : memref<15x128x128xbf16, #tpu.memory_space<vmem>>, vector<1x128x128xbf16>
    %33 = vector.shape_cast %32 : vector<1x128x128xbf16> to vector<128x128xbf16>
    %cst_23 = arith.constant dense<0.000000e+00> : vector<16x128xf32>
    %34 = tpu.matmul %31, %33, %cst_23 {dimension_numbers = #tpu.dot_dimension_numbers<[1], [0], [0], [1], [0, 0, 1, 1], [], []>} : vector<16x128xbf16>, vector<128x128xbf16>, vector<16x128xf32> -> vector<16x128xf32>
    %35 = arith.addf %26, %34 : vector<16x128xf32>
    %cst_24 = arith.constant dense<0.000000e+00> : vector<16x128xf32>
    %36 = tpu.matmul %0, %31, %cst_24 {dimension_numbers = #tpu.dot_dimension_numbers<[1], [0], [0], [1], [0, 0, 1, 1], [], []>} : vector<16x16xbf16>, vector<16x128xbf16>, vector<16x128xf32> -> vector<16x128xf32>
    %cst_25 = arith.constant 2.000000e+00 : f32
    %37 = vector.broadcast %cst_25 : f32 to vector<16x128xf32>
    %38 = arith.mulf %37, %36 : vector<16x128xf32>
    %39 = arith.subf %38, %21 : vector<16x128xf32>
    %40 = arith.truncf %39 : vector<16x128xf32> to vector<16x128xbf16>
    %c3 = arith.constant 3 : index
    %c0_26 = arith.constant 0 : index
    %c0_27 = arith.constant 0 : index
    %41 = vector.load %arg3[%c3, %c0_26, %c0_27] : memref<15x128x128xbf16, #tpu.memory_space<vmem>>, vector<1x128x128xbf16>
    %42 = vector.shape_cast %41 : vector<1x128x128xbf16> to vector<128x128xbf16>
    %cst_28 = arith.constant dense<0.000000e+00> : vector<16x128xf32>
    %43 = tpu.matmul %40, %42, %cst_28 {dimension_numbers = #tpu.dot_dimension_numbers<[1], [0], [0], [1], [0, 0, 1, 1], [], []>} : vector<16x128xbf16>, vector<128x128xbf16>, vector<16x128xf32> -> vector<16x128xf32>
    %44 = arith.addf %35, %43 : vector<16x128xf32>
    %cst_29 = arith.constant dense<0.000000e+00> : vector<16x128xf32>
    %45 = tpu.matmul %0, %40, %cst_29 {dimension_numbers = #tpu.dot_dimension_numbers<[1], [0], [0], [1], [0, 0, 1, 1], [], []>} : vector<16x16xbf16>, vector<16x128xbf16>, vector<16x128xf32> -> vector<16x128xf32>
    %cst_30 = arith.constant 2.000000e+00 : f32
    %46 = vector.broadcast %cst_30 : f32 to vector<16x128xf32>
    %47 = arith.mulf %46, %45 : vector<16x128xf32>
    %48 = arith.subf %47, %30 : vector<16x128xf32>
    %49 = arith.truncf %48 : vector<16x128xf32> to vector<16x128xbf16>
    %c4 = arith.constant 4 : index
    %c0_31 = arith.constant 0 : index
    %c0_32 = arith.constant 0 : index
    %50 = vector.load %arg3[%c4, %c0_31, %c0_32] : memref<15x128x128xbf16, #tpu.memory_space<vmem>>, vector<1x128x128xbf16>
    %51 = vector.shape_cast %50 : vector<1x128x128xbf16> to vector<128x128xbf16>
    %cst_33 = arith.constant dense<0.000000e+00> : vector<16x128xf32>
    %52 = tpu.matmul %49, %51, %cst_33 {dimension_numbers = #tpu.dot_dimension_numbers<[1], [0], [0], [1], [0, 0, 1, 1], [], []>} : vector<16x128xbf16>, vector<128x128xbf16>, vector<16x128xf32> -> vector<16x128xf32>
    %53 = arith.addf %44, %52 : vector<16x128xf32>
    %c0_34 = arith.constant 0 : index
    %c0_35 = arith.constant 0 : index
    %c0_36 = arith.constant 0 : index
    %54 = vector.load %arg4[%c0_34, %c0_35, %c0_36] : memref<3x1x128xf32, #tpu.memory_space<vmem>>, vector<1x1x128xf32>
    %55 = vector.shape_cast %54 : vector<1x1x128xf32> to vector<1x128xf32>
    %56 = vector.broadcast %55 : vector<1x128xf32> to vector<16x128xf32>
    %57 = arith.addf %53, %56 : vector<16x128xf32>
    %cst_37 = arith.constant 0.000000e+00 : f32
    %58 = vector.broadcast %cst_37 : f32 to vector<16x128xf32>
    %59 = arith.maximumf %57, %58 : vector<16x128xf32>
    %60 = arith.addf %59, %11 : vector<16x128xf32>
    %61 = arith.truncf %60 : vector<16x128xf32> to vector<16x128xbf16>
    %c1_38 = arith.constant 1 : index
    %c0_39 = arith.constant 0 : index
    %c0_40 = arith.constant 0 : index
    %62 = vector.load %arg2[%c1_38, %c0_39, %c0_40] : memref<3x128x256xbf16, #tpu.memory_space<vmem>>, vector<1x128x256xbf16>
    %63 = vector.shape_cast %62 : vector<1x128x256xbf16> to vector<128x256xbf16>
    %cst_41 = arith.constant dense<0.000000e+00> : vector<16x256xf32>
    %64 = tpu.matmul %61, %63, %cst_41 {dimension_numbers = #tpu.dot_dimension_numbers<[1], [0], [0], [1], [0, 0, 1, 1], [], []>} : vector<16x128xbf16>, vector<128x256xbf16>, vector<16x256xf32> -> vector<16x256xf32>
    %65 = vector.extract_strided_slice %64 {offsets = [0, 0], sizes = [16, 128], strides = [1, 1]} : vector<16x256xf32> to vector<16x128xf32>
    %66 = vector.extract_strided_slice %64 {offsets = [0, 128], sizes = [16, 128], strides = [1, 1]} : vector<16x256xf32> to vector<16x128xf32>
    %c1_42 = arith.constant 1 : index
    %c0_43 = arith.constant 0 : index
    %c0_44 = arith.constant 0 : index
    %67 = vector.load %arg5[%c1_42, %c0_43, %c0_44] : memref<3x1x128xf32, #tpu.memory_space<vmem>>, vector<1x1x128xf32>
    %68 = vector.shape_cast %67 : vector<1x1x128xf32> to vector<1x128xf32>
    %69 = vector.broadcast %68 : vector<1x128xf32> to vector<16x128xf32>
    %70 = arith.addf %66, %69 : vector<16x128xf32>
    %cst_45 = arith.constant dense<0.000000e+00> : vector<16x128xf32>
    %71 = tpu.matmul %0, %61, %cst_45 {dimension_numbers = #tpu.dot_dimension_numbers<[1], [0], [0], [1], [0, 0, 1, 1], [], []>} : vector<16x16xbf16>, vector<16x128xbf16>, vector<16x128xf32> -> vector<16x128xf32>
    %72 = arith.truncf %71 : vector<16x128xf32> to vector<16x128xbf16>
    %c5 = arith.constant 5 : index
    %c0_46 = arith.constant 0 : index
    %c0_47 = arith.constant 0 : index
    %73 = vector.load %arg3[%c5, %c0_46, %c0_47] : memref<15x128x128xbf16, #tpu.memory_space<vmem>>, vector<1x128x128xbf16>
    %74 = vector.shape_cast %73 : vector<1x128x128xbf16> to vector<128x128xbf16>
    %cst_48 = arith.constant dense<0.000000e+00> : vector<16x128xf32>
    %75 = tpu.matmul %72, %74, %cst_48 {dimension_numbers = #tpu.dot_dimension_numbers<[1], [0], [0], [1], [0, 0, 1, 1], [], []>} : vector<16x128xbf16>, vector<128x128xbf16>, vector<16x128xf32> -> vector<16x128xf32>
    %76 = arith.addf %65, %75 : vector<16x128xf32>
    %cst_49 = arith.constant dense<0.000000e+00> : vector<16x128xf32>
    %77 = tpu.matmul %0, %72, %cst_49 {dimension_numbers = #tpu.dot_dimension_numbers<[1], [0], [0], [1], [0, 0, 1, 1], [], []>} : vector<16x16xbf16>, vector<16x128xbf16>, vector<16x128xf32> -> vector<16x128xf32>
    %cst_50 = arith.constant 2.000000e+00 : f32
    %78 = vector.broadcast %cst_50 : f32 to vector<16x128xf32>
    %79 = arith.mulf %78, %77 : vector<16x128xf32>
    %80 = arith.subf %79, %60 : vector<16x128xf32>
    %81 = arith.truncf %80 : vector<16x128xf32> to vector<16x128xbf16>
    %c6 = arith.constant 6 : index
    %c0_51 = arith.constant 0 : index
    %c0_52 = arith.constant 0 : index
    %82 = vector.load %arg3[%c6, %c0_51, %c0_52] : memref<15x128x128xbf16, #tpu.memory_space<vmem>>, vector<1x128x128xbf16>
    %83 = vector.shape_cast %82 : vector<1x128x128xbf16> to vector<128x128xbf16>
    %cst_53 = arith.constant dense<0.000000e+00> : vector<16x128xf32>
    %84 = tpu.matmul %81, %83, %cst_53 {dimension_numbers = #tpu.dot_dimension_numbers<[1], [0], [0], [1], [0, 0, 1, 1], [], []>} : vector<16x128xbf16>, vector<128x128xbf16>, vector<16x128xf32> -> vector<16x128xf32>
    %85 = arith.addf %76, %84 : vector<16x128xf32>
    %cst_54 = arith.constant dense<0.000000e+00> : vector<16x128xf32>
    %86 = tpu.matmul %0, %81, %cst_54 {dimension_numbers = #tpu.dot_dimension_numbers<[1], [0], [0], [1], [0, 0, 1, 1], [], []>} : vector<16x16xbf16>, vector<16x128xbf16>, vector<16x128xf32> -> vector<16x128xf32>
    %cst_55 = arith.constant 2.000000e+00 : f32
    %87 = vector.broadcast %cst_55 : f32 to vector<16x128xf32>
    %88 = arith.mulf %87, %86 : vector<16x128xf32>
    %89 = arith.subf %88, %71 : vector<16x128xf32>
    %90 = arith.truncf %89 : vector<16x128xf32> to vector<16x128xbf16>
    %c7 = arith.constant 7 : index
    %c0_56 = arith.constant 0 : index
    %c0_57 = arith.constant 0 : index
    %91 = vector.load %arg3[%c7, %c0_56, %c0_57] : memref<15x128x128xbf16, #tpu.memory_space<vmem>>, vector<1x128x128xbf16>
    %92 = vector.shape_cast %91 : vector<1x128x128xbf16> to vector<128x128xbf16>
    %cst_58 = arith.constant dense<0.000000e+00> : vector<16x128xf32>
    %93 = tpu.matmul %90, %92, %cst_58 {dimension_numbers = #tpu.dot_dimension_numbers<[1], [0], [0], [1], [0, 0, 1, 1], [], []>} : vector<16x128xbf16>, vector<128x128xbf16>, vector<16x128xf32> -> vector<16x128xf32>
    %94 = arith.addf %85, %93 : vector<16x128xf32>
    %cst_59 = arith.constant dense<0.000000e+00> : vector<16x128xf32>
    %95 = tpu.matmul %0, %90, %cst_59 {dimension_numbers = #tpu.dot_dimension_numbers<[1], [0], [0], [1], [0, 0, 1, 1], [], []>} : vector<16x16xbf16>, vector<16x128xbf16>, vector<16x128xf32> -> vector<16x128xf32>
    %cst_60 = arith.constant 2.000000e+00 : f32
    %96 = vector.broadcast %cst_60 : f32 to vector<16x128xf32>
    %97 = arith.mulf %96, %95 : vector<16x128xf32>
    %98 = arith.subf %97, %80 : vector<16x128xf32>
    %99 = arith.truncf %98 : vector<16x128xf32> to vector<16x128xbf16>
    %c8 = arith.constant 8 : index
    %c0_61 = arith.constant 0 : index
    %c0_62 = arith.constant 0 : index
    %100 = vector.load %arg3[%c8, %c0_61, %c0_62] : memref<15x128x128xbf16, #tpu.memory_space<vmem>>, vector<1x128x128xbf16>
    %101 = vector.shape_cast %100 : vector<1x128x128xbf16> to vector<128x128xbf16>
    %cst_63 = arith.constant dense<0.000000e+00> : vector<16x128xf32>
    %102 = tpu.matmul %99, %101, %cst_63 {dimension_numbers = #tpu.dot_dimension_numbers<[1], [0], [0], [1], [0, 0, 1, 1], [], []>} : vector<16x128xbf16>, vector<128x128xbf16>, vector<16x128xf32> -> vector<16x128xf32>
    %103 = arith.addf %94, %102 : vector<16x128xf32>
    %cst_64 = arith.constant dense<0.000000e+00> : vector<16x128xf32>
    %104 = tpu.matmul %0, %99, %cst_64 {dimension_numbers = #tpu.dot_dimension_numbers<[1], [0], [0], [1], [0, 0, 1, 1], [], []>} : vector<16x16xbf16>, vector<16x128xbf16>, vector<16x128xf32> -> vector<16x128xf32>
    %cst_65 = arith.constant 2.000000e+00 : f32
    %105 = vector.broadcast %cst_65 : f32 to vector<16x128xf32>
    %106 = arith.mulf %105, %104 : vector<16x128xf32>
    %107 = arith.subf %106, %89 : vector<16x128xf32>
    %108 = arith.truncf %107 : vector<16x128xf32> to vector<16x128xbf16>
    %c9 = arith.constant 9 : index
    %c0_66 = arith.constant 0 : index
    %c0_67 = arith.constant 0 : index
    %109 = vector.load %arg3[%c9, %c0_66, %c0_67] : memref<15x128x128xbf16, #tpu.memory_space<vmem>>, vector<1x128x128xbf16>
    %110 = vector.shape_cast %109 : vector<1x128x128xbf16> to vector<128x128xbf16>
    %cst_68 = arith.constant dense<0.000000e+00> : vector<16x128xf32>
    %111 = tpu.matmul %108, %110, %cst_68 {dimension_numbers = #tpu.dot_dimension_numbers<[1], [0], [0], [1], [0, 0, 1, 1], [], []>} : vector<16x128xbf16>, vector<128x128xbf16>, vector<16x128xf32> -> vector<16x128xf32>
    %112 = arith.addf %103, %111 : vector<16x128xf32>
    %c1_69 = arith.constant 1 : index
    %c0_70 = arith.constant 0 : index
    %c0_71 = arith.constant 0 : index
    %113 = vector.load %arg4[%c1_69, %c0_70, %c0_71] : memref<3x1x128xf32, #tpu.memory_space<vmem>>, vector<1x1x128xf32>
    %114 = vector.shape_cast %113 : vector<1x1x128xf32> to vector<1x128xf32>
    %115 = vector.broadcast %114 : vector<1x128xf32> to vector<16x128xf32>
    %116 = arith.addf %112, %115 : vector<16x128xf32>
    %cst_72 = arith.constant 0.000000e+00 : f32
    %117 = vector.broadcast %cst_72 : f32 to vector<16x128xf32>
    %118 = arith.maximumf %116, %117 : vector<16x128xf32>
    %119 = arith.addf %118, %70 : vector<16x128xf32>
    %120 = arith.truncf %119 : vector<16x128xf32> to vector<16x128xbf16>
    %c2_73 = arith.constant 2 : index
    %c0_74 = arith.constant 0 : index
    %c0_75 = arith.constant 0 : index
    %121 = vector.load %arg2[%c2_73, %c0_74, %c0_75] : memref<3x128x256xbf16, #tpu.memory_space<vmem>>, vector<1x128x256xbf16>
    %122 = vector.shape_cast %121 : vector<1x128x256xbf16> to vector<128x256xbf16>
    %cst_76 = arith.constant dense<0.000000e+00> : vector<16x256xf32>
    %123 = tpu.matmul %120, %122, %cst_76 {dimension_numbers = #tpu.dot_dimension_numbers<[1], [0], [0], [1], [0, 0, 1, 1], [], []>} : vector<16x128xbf16>, vector<128x256xbf16>, vector<16x256xf32> -> vector<16x256xf32>
    %124 = vector.extract_strided_slice %123 {offsets = [0, 0], sizes = [16, 128], strides = [1, 1]} : vector<16x256xf32> to vector<16x128xf32>
    %125 = vector.extract_strided_slice %123 {offsets = [0, 128], sizes = [16, 128], strides = [1, 1]} : vector<16x256xf32> to vector<16x128xf32>
    %c2_77 = arith.constant 2 : index
    %c0_78 = arith.constant 0 : index
    %c0_79 = arith.constant 0 : index
    %126 = vector.load %arg5[%c2_77, %c0_78, %c0_79] : memref<3x1x128xf32, #tpu.memory_space<vmem>>, vector<1x1x128xf32>
    %127 = vector.shape_cast %126 : vector<1x1x128xf32> to vector<1x128xf32>
    %128 = vector.broadcast %127 : vector<1x128xf32> to vector<16x128xf32>
    %129 = arith.addf %125, %128 : vector<16x128xf32>
    %cst_80 = arith.constant dense<0.000000e+00> : vector<16x128xf32>
    %130 = tpu.matmul %0, %120, %cst_80 {dimension_numbers = #tpu.dot_dimension_numbers<[1], [0], [0], [1], [0, 0, 1, 1], [], []>} : vector<16x16xbf16>, vector<16x128xbf16>, vector<16x128xf32> -> vector<16x128xf32>
    %131 = arith.truncf %130 : vector<16x128xf32> to vector<16x128xbf16>
    %c10 = arith.constant 10 : index
    %c0_81 = arith.constant 0 : index
    %c0_82 = arith.constant 0 : index
    %132 = vector.load %arg3[%c10, %c0_81, %c0_82] : memref<15x128x128xbf16, #tpu.memory_space<vmem>>, vector<1x128x128xbf16>
    %133 = vector.shape_cast %132 : vector<1x128x128xbf16> to vector<128x128xbf16>
    %cst_83 = arith.constant dense<0.000000e+00> : vector<16x128xf32>
    %134 = tpu.matmul %131, %133, %cst_83 {dimension_numbers = #tpu.dot_dimension_numbers<[1], [0], [0], [1], [0, 0, 1, 1], [], []>} : vector<16x128xbf16>, vector<128x128xbf16>, vector<16x128xf32> -> vector<16x128xf32>
    %135 = arith.addf %124, %134 : vector<16x128xf32>
    %cst_84 = arith.constant dense<0.000000e+00> : vector<16x128xf32>
    %136 = tpu.matmul %0, %131, %cst_84 {dimension_numbers = #tpu.dot_dimension_numbers<[1], [0], [0], [1], [0, 0, 1, 1], [], []>} : vector<16x16xbf16>, vector<16x128xbf16>, vector<16x128xf32> -> vector<16x128xf32>
    %cst_85 = arith.constant 2.000000e+00 : f32
    %137 = vector.broadcast %cst_85 : f32 to vector<16x128xf32>
    %138 = arith.mulf %137, %136 : vector<16x128xf32>
    %139 = arith.subf %138, %119 : vector<16x128xf32>
    %140 = arith.truncf %139 : vector<16x128xf32> to vector<16x128xbf16>
    %c11 = arith.constant 11 : index
    %c0_86 = arith.constant 0 : index
    %c0_87 = arith.constant 0 : index
    %141 = vector.load %arg3[%c11, %c0_86, %c0_87] : memref<15x128x128xbf16, #tpu.memory_space<vmem>>, vector<1x128x128xbf16>
    %142 = vector.shape_cast %141 : vector<1x128x128xbf16> to vector<128x128xbf16>
    %cst_88 = arith.constant dense<0.000000e+00> : vector<16x128xf32>
    %143 = tpu.matmul %140, %142, %cst_88 {dimension_numbers = #tpu.dot_dimension_numbers<[1], [0], [0], [1], [0, 0, 1, 1], [], []>} : vector<16x128xbf16>, vector<128x128xbf16>, vector<16x128xf32> -> vector<16x128xf32>
    %144 = arith.addf %135, %143 : vector<16x128xf32>
    %cst_89 = arith.constant dense<0.000000e+00> : vector<16x128xf32>
    %145 = tpu.matmul %0, %140, %cst_89 {dimension_numbers = #tpu.dot_dimension_numbers<[1], [0], [0], [1], [0, 0, 1, 1], [], []>} : vector<16x16xbf16>, vector<16x128xbf16>, vector<16x128xf32> -> vector<16x128xf32>
    %cst_90 = arith.constant 2.000000e+00 : f32
    %146 = vector.broadcast %cst_90 : f32 to vector<16x128xf32>
    %147 = arith.mulf %146, %145 : vector<16x128xf32>
    %148 = arith.subf %147, %130 : vector<16x128xf32>
    %149 = arith.truncf %148 : vector<16x128xf32> to vector<16x128xbf16>
    %c12 = arith.constant 12 : index
    %c0_91 = arith.constant 0 : index
    %c0_92 = arith.constant 0 : index
    %150 = vector.load %arg3[%c12, %c0_91, %c0_92] : memref<15x128x128xbf16, #tpu.memory_space<vmem>>, vector<1x128x128xbf16>
    %151 = vector.shape_cast %150 : vector<1x128x128xbf16> to vector<128x128xbf16>
    %cst_93 = arith.constant dense<0.000000e+00> : vector<16x128xf32>
    %152 = tpu.matmul %149, %151, %cst_93 {dimension_numbers = #tpu.dot_dimension_numbers<[1], [0], [0], [1], [0, 0, 1, 1], [], []>} : vector<16x128xbf16>, vector<128x128xbf16>, vector<16x128xf32> -> vector<16x128xf32>
    %153 = arith.addf %144, %152 : vector<16x128xf32>
    %cst_94 = arith.constant dense<0.000000e+00> : vector<16x128xf32>
    %154 = tpu.matmul %0, %149, %cst_94 {dimension_numbers = #tpu.dot_dimension_numbers<[1], [0], [0], [1], [0, 0, 1, 1], [], []>} : vector<16x16xbf16>, vector<16x128xbf16>, vector<16x128xf32> -> vector<16x128xf32>
    %cst_95 = arith.constant 2.000000e+00 : f32
    %155 = vector.broadcast %cst_95 : f32 to vector<16x128xf32>
    %156 = arith.mulf %155, %154 : vector<16x128xf32>
    %157 = arith.subf %156, %139 : vector<16x128xf32>
    %158 = arith.truncf %157 : vector<16x128xf32> to vector<16x128xbf16>
    %c13 = arith.constant 13 : index
    %c0_96 = arith.constant 0 : index
    %c0_97 = arith.constant 0 : index
    %159 = vector.load %arg3[%c13, %c0_96, %c0_97] : memref<15x128x128xbf16, #tpu.memory_space<vmem>>, vector<1x128x128xbf16>
    %160 = vector.shape_cast %159 : vector<1x128x128xbf16> to vector<128x128xbf16>
    %cst_98 = arith.constant dense<0.000000e+00> : vector<16x128xf32>
    %161 = tpu.matmul %158, %160, %cst_98 {dimension_numbers = #tpu.dot_dimension_numbers<[1], [0], [0], [1], [0, 0, 1, 1], [], []>} : vector<16x128xbf16>, vector<128x128xbf16>, vector<16x128xf32> -> vector<16x128xf32>
    %162 = arith.addf %153, %161 : vector<16x128xf32>
    %cst_99 = arith.constant dense<0.000000e+00> : vector<16x128xf32>
    %163 = tpu.matmul %0, %158, %cst_99 {dimension_numbers = #tpu.dot_dimension_numbers<[1], [0], [0], [1], [0, 0, 1, 1], [], []>} : vector<16x16xbf16>, vector<16x128xbf16>, vector<16x128xf32> -> vector<16x128xf32>
    %cst_100 = arith.constant 2.000000e+00 : f32
    %164 = vector.broadcast %cst_100 : f32 to vector<16x128xf32>
    %165 = arith.mulf %164, %163 : vector<16x128xf32>
    %166 = arith.subf %165, %148 : vector<16x128xf32>
    %167 = arith.truncf %166 : vector<16x128xf32> to vector<16x128xbf16>
    %c14 = arith.constant 14 : index
    %c0_101 = arith.constant 0 : index
    %c0_102 = arith.constant 0 : index
    %168 = vector.load %arg3[%c14, %c0_101, %c0_102] : memref<15x128x128xbf16, #tpu.memory_space<vmem>>, vector<1x128x128xbf16>
    %169 = vector.shape_cast %168 : vector<1x128x128xbf16> to vector<128x128xbf16>
    %cst_103 = arith.constant dense<0.000000e+00> : vector<16x128xf32>
    %170 = tpu.matmul %167, %169, %cst_103 {dimension_numbers = #tpu.dot_dimension_numbers<[1], [0], [0], [1], [0, 0, 1, 1], [], []>} : vector<16x128xbf16>, vector<128x128xbf16>, vector<16x128xf32> -> vector<16x128xf32>
    %171 = arith.addf %162, %170 : vector<16x128xf32>
    %c2_104 = arith.constant 2 : index
    %c0_105 = arith.constant 0 : index
    %c0_106 = arith.constant 0 : index
    %172 = vector.load %arg4[%c2_104, %c0_105, %c0_106] : memref<3x1x128xf32, #tpu.memory_space<vmem>>, vector<1x1x128xf32>
    %173 = vector.shape_cast %172 : vector<1x1x128xf32> to vector<1x128xf32>
    %174 = vector.broadcast %173 : vector<1x128xf32> to vector<16x128xf32>
    %175 = arith.addf %171, %174 : vector<16x128xf32>
    %cst_107 = arith.constant 0.000000e+00 : f32
    %176 = vector.broadcast %cst_107 : f32 to vector<16x128xf32>
    %177 = arith.maximumf %175, %176 : vector<16x128xf32>
    %178 = arith.addf %177, %129 : vector<16x128xf32>
    %c0_108 = arith.constant 0 : index
    %c0_109 = arith.constant 0 : index
    %179 = vector.load %arg1[%c0_108, %c0_109] : memref<16x128xf32, #tpu.memory_space<vmem>>, vector<16x128xf32>
    %180 = arith.addf %178, %179 : vector<16x128xf32>
    %181 = arith.truncf %180 : vector<16x128xf32> to vector<16x128xbf16>
    %c0_110 = arith.constant 0 : index
    %c0_111 = arith.constant 0 : index
    %c0_112 = arith.constant 0 : index
    %182 = vector.load %arg6[%c0_110, %c0_111, %c0_112] : memref<2x128x128xbf16, #tpu.memory_space<vmem>>, vector<1x128x128xbf16>
    %183 = vector.shape_cast %182 : vector<1x128x128xbf16> to vector<128x128xbf16>
    %cst_113 = arith.constant dense<0.000000e+00> : vector<16x128xf32>
    %184 = tpu.matmul %181, %183, %cst_113 {dimension_numbers = #tpu.dot_dimension_numbers<[1], [0], [0], [1], [0, 0, 1, 1], [], []>} : vector<16x128xbf16>, vector<128x128xbf16>, vector<16x128xf32> -> vector<16x128xf32>
    %cst_114 = arith.constant dense<0.000000e+00> : vector<16x128xf32>
    %185 = tpu.matmul %0, %181, %cst_114 {dimension_numbers = #tpu.dot_dimension_numbers<[1], [0], [0], [1], [0, 0, 1, 1], [], []>} : vector<16x16xbf16>, vector<16x128xbf16>, vector<16x128xf32> -> vector<16x128xf32>
    %186 = arith.truncf %185 : vector<16x128xf32> to vector<16x128xbf16>
    %c1_115 = arith.constant 1 : index
    %c0_116 = arith.constant 0 : index
    %c0_117 = arith.constant 0 : index
    %187 = vector.load %arg6[%c1_115, %c0_116, %c0_117] : memref<2x128x128xbf16, #tpu.memory_space<vmem>>, vector<1x128x128xbf16>
    %188 = vector.shape_cast %187 : vector<1x128x128xbf16> to vector<128x128xbf16>
    %cst_118 = arith.constant dense<0.000000e+00> : vector<16x128xf32>
    %189 = tpu.matmul %186, %188, %cst_118 {dimension_numbers = #tpu.dot_dimension_numbers<[1], [0], [0], [1], [0, 0, 1, 1], [], []>} : vector<16x128xbf16>, vector<128x128xbf16>, vector<16x128xf32> -> vector<16x128xf32>
    %190 = arith.addf %184, %189 : vector<16x128xf32>
    %c0_119 = arith.constant 0 : index
    %c0_120 = arith.constant 0 : index
    %191 = vector.load %arg7[%c0_119, %c0_120] : memref<1x128xf32, #tpu.memory_space<vmem>>, vector<1x128xf32>
    %192 = vector.broadcast %191 : vector<1x128xf32> to vector<16x128xf32>
    %193 = arith.addf %190, %192 : vector<16x128xf32>
    %c0_121 = arith.constant 0 : index
    %c0_122 = arith.constant 0 : index
    %194 = vector.load %arg8[%c0_121, %c0_122] : memref<16x128xf32, #tpu.memory_space<vmem>>, vector<16x128xf32>
    tpu.vector_store %arg8[%c0_121, %c0_122], %193 {strides = array<i32>} : memref<16x128xf32, #tpu.memory_space<vmem>>, vector<16x128xf32>,
    return
  }
}

</mosaic_0001>

<bundles_post_ra>
// kernel: tpu_custom_call.1
= control target key start
LH: loop header
LB: loop body
LE: loop exit
PB: predicated region body
PF: predicated region fallthrough
CT: control target
= control target key end

     0   :  { %13 = vsyncpa [#allocation3], 0  ;;  %s4878_s0 = inlined_call_operand.hbm [shape: bf16[16,16], index: 0, kind: input, shape index: {}]   ;;  %s4879_s1 = inlined_call_operand.hbm [shape: f32[16,128], index: 1, kind: input, shape index: {}]   ;;  %s4880_s2 = inlined_call_operand.hbm [shape: bf16[3,128,256], index: 2, kind: input, shape index: {}]   ;;  %s4881_s3 = inlined_call_operand.hbm [shape: bf16[15,128,128], index: 3, kind: input, shape index: {}]   ;;  %s4882_s4 = inlined_call_operand.vmem [shape: f32[3,1,128], index: 4, kind: input, shape index: {}]   ;;  %s4883_s5 = inlined_call_operand.vmem [shape: f32[3,1,128], index: 5, kind: input, shape index: {}]   ;;  %s4884_s6 = inlined_call_operand.hbm [shape: bf16[2,128,128], index: 6, kind: input, shape index: {}]   ;;  %s4885_s7 = inlined_call_operand.vmem [shape: f32[1,128], index: 7, kind: input, shape index: {}]   ;;  %s4886_s8 = inlined_call_operand.hbm [shape: f32[16,128], index: 8, kind: output, shape index: {}]  }
   0x1   :  { %14 = vsyncpa [#allocation6], 0 }
   0x2   :  { %15 = vsyncpa [#allocation9], 0 }
   0x3   :  { %16 = vsyncpa [#allocation4], 0  ;;  %s4374_s27 = smov [#allocation5]  }
   0x4   :  { %s34_s28 = sshll.u32 %s4374_s27, 4  ;;  %s35_s28 = int_to_ptr.vmem [resolvable:$true] %s34_s28 }
   0x5   :  { %s4254_s29 = scalar_lea.vmem %s35_s28, 256  ;;  %p4259_p1 = scmp.lt.s32.totalorder %s35_s28, %s35_s28 }
   0x6   :  { %p4255_p0 = scmp.ne.s32.totalorder %s35_s28, %s4254_s29  ;;  %p4260_p2 = scmp.lt.s32.totalorder %s4254_s29, %s4254_s29 }
   0x8   :  { %p4261_p3 = por %p4260_p2, %p4259_p1 }
   0xa   :  { %p4262_p4 = pnand %p4261_p3, %p4255_p0 }
   0xc   :  { %4265 = shalt.err (!%p4262_p4)
}
   0xd   :  { %s4375_s30 = smov 128   ;;  %s4376_s9 = smov 8  }
   0xe   :  { %40 = dma.hbm_to_vmem [thread:$0]  %s4879_s1, 256, %s35_s28, [#allocation6], %s4375_s30, %s4375_s30, %s4376_s9  }
   0xf   :  { %s4377_s12 = smov [#allocation8]   ;;  %s4378_s14 = smov [#allocation2]  }
  0x10   :  { %s58_s13 = sshll.u32 %s4377_s12, 4  ;;  %s22_s15 = sshll.u32 %s4378_s14, 4  ;;  %s59_s13 = int_to_ptr.vmem [resolvable:$true] %s58_s13  ;;  %s23_s15 = int_to_ptr.vmem [resolvable:$true] %s22_s15 }
  0x11   :  { %s4274_s16 = scalar_lea.vmem %s59_s13, 15360  ;;  %p4279_p6 = scmp.lt.s32.totalorder %s59_s13, %s59_s13 }
  0x12   :  { %p4275_p5 = scmp.ne.s32.totalorder %s59_s13, %s4274_s16  ;;  %p4280_p7 = scmp.lt.s32.totalorder %s4274_s16, %s4274_s16 }
  0x14   :  { %p4281_p8 = por %p4280_p7, %p4279_p6 }
  0x16   :  { %p4282_p9 = pnand %p4281_p8, %p4275_p5 }
  0x18   :  { %4285 = shalt.err (!%p4282_p9)
}
  0x19   :  { %s4379_s17 = smov 64   ;;  %s4380_s18 = smov 4  }
  0x1a   :  { %64 = dma.hbm_to_vmem [thread:$0]  %s4881_s3, 15360, %s59_s13, [#allocation9], %s4379_s17, %s4379_s17, %s4380_s18  }
  0x1b   :  { %s4294_s1 = scalar_lea.vmem %s23_s15, 128  ;;  %p4299_p11 = scmp.lt.s32.totalorder %s23_s15, %s23_s15 }
  0x1c   :  { %p4295_p10 = scmp.ne.s32.totalorder %s23_s15, %s4294_s1  ;;  %p4300_p12 = scmp.lt.s32.totalorder %s4294_s1, %s4294_s1 }
  0x1e   :  { %p4301_p13 = por %p4300_p12, %p4299_p11 }
  0x20   :  { %p4302_p0 = pnand %p4301_p13, %p4295_p10 }
  0x22   :  { %4305 = shalt.err (!%p4302_p0)
}
  0x23   :  { %28 = dma.hbm_to_vmem [thread:$0]  %s4878_s0, 128, %s23_s15, [#allocation3], %s4379_s17, %s4379_s17, %s4380_s18  }
  0x24   :  { %s4381_s23 = smov [#allocation7]   ;;  %s4382_s25 = smov [#allocation10]  }
  0x25   :  { %s46_s24 = sshll.u32 %s4381_s23, 4  ;;  %s74_s3 = sshll.u32 %s4382_s25, 4  ;;  %s47_s24 = int_to_ptr.vmem [resolvable:$true] %s46_s24  ;;  %s75_s3 = int_to_ptr.vmem [resolvable:$true] %s74_s3 }
  0x26   :  { %s4314_s26 = scalar_lea.vmem %s47_s24, 6144  ;;  %p4319_p2 = scmp.lt.s32.totalorder %s47_s24, %s47_s24 }
  0x27   :  { %p4315_p1 = scmp.ne.s32.totalorder %s47_s24, %s4314_s26  ;;  %p4320_p3 = scmp.lt.s32.totalorder %s4314_s26, %s4314_s26 }
  0x29   :  { %p4321_p4 = por %p4320_p3, %p4319_p2 }
  0x2b   :  { %p4322_p5 = pnand %p4321_p4, %p4315_p1 }
  0x2d   :  { %4325 = shalt.err (!%p4322_p5)
}
  0x2e   :  { %52 = dma.hbm_to_vmem [thread:$0]  %s4880_s2, 6144, %s47_s24, [#allocation6], %s4375_s30, %s4375_s30, %s4376_s9  }
  0x2f   :  { %s4334_s0 = scalar_lea.vmem %s75_s3, 2048  ;;  %p4339_p7 = scmp.lt.s32.totalorder %s75_s3, %s75_s3 }
  0x30   :  { %p4335_p6 = scmp.ne.s32.totalorder %s75_s3, %s4334_s0  ;;  %p4340_p8 = scmp.lt.s32.totalorder %s4334_s0, %s4334_s0 }
  0x32   :  { %p4341_p9 = por %p4340_p8, %p4339_p7 }
  0x34   :  { %p4342_p10 = pnand %p4341_p9, %p4335_p6 }
  0x36   :  { %4345 = shalt.err (!%p4342_p10)
}
  0x37   :  { %80 = dma.hbm_to_vmem [thread:$0]  %s4884_s6, 2048, %s75_s3, [#allocation9], %s4379_s17, %s4379_s17, %s4380_s18  }
  0x38   :  { %4366 = dma.done.wait [#allocation3], 128  }
  0x39   :  { %4367 = vsyncadd [#allocation3], 4294967168 }
  0x3a   :  { %4368 = dma.done.wait [#allocation6], 6400  }
  0x3b   :  { %4369 = vsyncadd [#allocation6], 4294960896 }
  0x3c   :  { %4370 = dma.done.wait [#allocation9], 17408  }
  0x3d   :  { %4371 = vsyncadd [#allocation9], 4294949888  ;;  %v4383_v0 = vmov 0.0   ;;  %vm4384_vm0 = vmmov 0   ;;  %v4465_v1 = vld [vmem:[#allocation5] sm:$0xff]  ;;  %v4467_v2 = vld [vmem:[#allocation5 + $0x8] sm:$0xff] }
  0x3e   :  { %3584 = vmatprep.subr.bf16.mxu1 %v4383_v0  ;;  %3586 = vmatprep.mubr.msk.bf16.mxu1 %vm4384_vm0, %v4383_v0  ;;  %v4471_v3 = vpack.c.bf16 %v4467_v2, %v4465_v1  ;;  %v4473_v4 = vld [vmem:[#allocation2] sm:$0xff]   ;;  %v4034_v5 = vld [vmem:[#allocation7 + $0x74] ss:$8 sps:$4 sm:$0xff]   ;;  %vm257_vm1 = vcmask 130048   ;;  %v4037_v7 = vld [vmem:[#allocation7 + $0x70] ss:$8 sps:$4 sm:$0xff]  }
  0x3f   :  { %v4036_v6 = vld [vmem:[#allocation8 + $0x38] sm:$0xff]   ;;  %200 = vmatprep.subr.bf16.mxu0 %v4034_v5  ;;  %v4038_v8 = vld [vmem:[#allocation7 + $0x64] ss:$8 sps:$4 sm:$0xff]   ;;  %v4040_v9 = vld [vmem:[#allocation8 + $0x30] sm:$0xff]   ;;  %v4385_v29 = vmov 0   ;;  %s4386_s1 = smov [#allocation11]  }
  0x40   :  { %3585 = vmatpush3.bf16.msra.mxu1 %v4471_v3  ;;  %201 = vmatpush1.bf16.msra.mxu0 %v4037_v7  ;;  %v4041_v10 = vld [vmem:[#allocation7 + $0x60] ss:$8 sps:$4 sm:$0xff]   ;;  %v4042_v11 = vld [vmem:[#allocation7 + $0x54] ss:$8 sps:$4 sm:$0xff]   ;;  %v4045_v12 = vld [vmem:[#allocation7 + $0x50] ss:$8 sps:$4 sm:$0xff]  }
  0x41   :  { %3590 = vmatprep.subr.bf16.mxu1 %v4383_v0  ;;  %202 = vmatprep.subr.bf16.mxu0 %v4038_v8  ;;  %v4046_v13 = vld [vmem:[#allocation7 + $0x44] ss:$8 sps:$4 sm:$0xff]   ;;  %v4049_v15 = vld [vmem:[#allocation7 + $0x40] ss:$8 sps:$4 sm:$0xff]   ;;  %v4050_v16 = vld [vmem:[#allocation7 + $0x34] ss:$8 sps:$4 sm:$0xff]  }
  0x42   :  { %v4044_v14 = vld [vmem:[#allocation8 + $0x28] sm:$0xff]   ;;  %v4048_v17 = vld [vmem:[#allocation8 + $0x20] sm:$0xff]   ;;  %v4052_v18 = vld [vmem:[#allocation8 + $0x18] sm:$0xff]   ;;  %232 = vmatprep.mubr.bf16.mxu0 %v4385_v29  ;;  %s3173_s21 = sshll.u32 %s4386_s1, 4  ;;  %s3174_s21 = int_to_ptr.vmem [resolvable:$true] %s3173_s21 }
  0x43   :  { %3587 = vmatmul.mubr.msk.bf16.vlgmr.msra.gmra.mxu1 %vm257_vm1, %v4473_v4  ;;  %v4053_v19 = vld [vmem:[#allocation7 + $0x30] ss:$8 sps:$4 sm:$0xff]   ;;  %v4054_v20 = vld [vmem:[#allocation7 + $0x24] ss:$8 sps:$4 sm:$0xff]   ;;  %v4057_v21 = vld [vmem:[#allocation7 + $0x20] ss:$8 sps:$4 sm:$0xff]   ;;  %p4351_p12 = scmp.lt.s32.totalorder %s3174_s21, %s3174_s21 }
  0x44   :  { %3591 = vmatpush3.bf16.msra.mxu1 %v4036_v6  ;;  %3606 = vmatprep.mubr.msk.bf16.mxu1 %vm4384_vm0, %v4383_v0  ;;  %v4058_v22 = vld [vmem:[#allocation7 + $0x14] ss:$8 sps:$4 sm:$0xff]   ;;  %v4061_v24 = vld [vmem:[#allocation7 + $0x10] ss:$8 sps:$4 sm:$0xff]   ;;  %v4060_v25 = vld [vmem:[#allocation8 + $0x8] sm:$0xff]   ;;  %s4346_s22 = scalar_lea.vmem %s3174_s21, 256 }
  0x45   :  { %3592 = vmatprep.subr.bf16.mxu1 %v4383_v0  ;;  %203 = vmatpush1.bf16.msra.mxu0 %v4041_v10  ;;  %v4056_v23 = vld [vmem:[#allocation8 + $0x10] sm:$0xff]   ;;  %v4062_v26 = vld [vmem:[#allocation7 + $0x4] ss:$8 sps:$4 sm:$0xff]   ;;  %v4065_v28 = vld [vmem:[#allocation7] ss:$8 sps:$4 sm:$0xff]   ;;  %p4347_p11 = scmp.ne.s32.totalorder %s3174_s21, %s4346_s22  ;;  %p4352_p13 = scmp.lt.s32.totalorder %s4346_s22, %s4346_s22 }
  0x46   :  { %204 = vmatprep.subr.bf16.mxu0 %v4042_v11  ;;  %v4064_v27 = vld [vmem:[#allocation8] sm:$0xff]   ;;  %v4066_v35 = vld [vmem:[#allocation8 + $0x78] sm:$0xff]   ;;  %v4067_v36 = vld [vmem:[#allocation8 + $0x70] sm:$0xff]  }
  0x47   :  { %v4068_v37 = vld [vmem:[#allocation8 + $0x68] sm:$0xff]   ;;  %v4069_v38 = vld [vmem:[#allocation8 + $0x60] sm:$0xff]   ;;  %v4070_v39 = vld [vmem:[#allocation8 + $0x58] sm:$0xff]   ;;  %p4353_p0 = por %p4352_p13, %p4351_p12 }
  0x48   :  { %3593 = vmatpush3.bf16.msra.mxu1 %v4040_v9  ;;  %v4071_v40 = vld [vmem:[#allocation8 + $0x50] sm:$0xff]   ;;  %v4072_v41 = vld [vmem:[#allocation8 + $0x48] sm:$0xff]   ;;  %v4073_v42 = vld [vmem:[#allocation8 + $0x40] sm:$0xff]  }
  0x49   :  { %3594 = vmatprep.subr.bf16.mxu1 %v4383_v0  ;;  %205 = vmatpush1.bf16.msra.mxu0 %v4045_v12  ;;  %v4074_v56 = vld [vmem:[#allocation8 + $0xb8] sm:$0xff]   ;;  %v4075_v57 = vld [vmem:[#allocation8 + $0xb0] sm:$0xff]   ;;  %v4076_v58 = vld [vmem:[#allocation8 + $0xa8] sm:$0xff]   ;;  %p4354_p1 = pnand %p4353_p0, %p4347_p11 }
  0x4a   :  { %206 = vmatprep.subr.bf16.mxu0 %v4046_v13  ;;  %v4077_v59 = vld [vmem:[#allocation8 + $0xa0] sm:$0xff]   ;;  %v4078_v60 = vld [vmem:[#allocation8 + $0x98] sm:$0xff]   ;;  %v4079_v61 = vld [vmem:[#allocation8 + $0x90] sm:$0xff]  }
  0x4b   :  { %v4080_v62 = vld [vmem:[#allocation8 + $0x88] sm:$0xff]   ;;  %v4081_v63 = vld [vmem:[#allocation8 + $0x80] sm:$0xff]  }
  0x4c   :  { %3595 = vmatpush3.bf16.msra.mxu1 %v4044_v14 }
  0x4d   :  { %3596 = vmatprep.subr.bf16.mxu1 %v4383_v0  ;;  %207 = vmatpush1.bf16.msra.mxu0 %v4049_v15 }
  0x4e   :  { %208 = vmatprep.subr.bf16.mxu0 %v4050_v16 }
  0x50   :  { %3597 = vmatpush3.bf16.msra.mxu1 %v4048_v17 }
  0x51   :  { %3598 = vmatprep.subr.bf16.mxu1 %v4383_v0  ;;  %209 = vmatpush1.bf16.msra.mxu0 %v4053_v19 }
  0x52   :  { %210 = vmatprep.subr.bf16.mxu0 %v4054_v20 }
  0x54   :  { %3599 = vmatpush3.bf16.msra.mxu1 %v4052_v18 }
  0x55   :  { %3600 = vmatprep.subr.bf16.mxu1 %v4383_v0  ;;  %211 = vmatpush1.bf16.msra.mxu0 %v4057_v21 }
  0x56   :  { %212 = vmatprep.subr.bf16.mxu0 %v4058_v22 }
  0x58   :  { %3601 = vmatpush3.bf16.msra.mxu1 %v4056_v23  ;;  %v4082_v23 = vld [vmem:[#allocation8 + $0xf8] sm:$0xff]  }
  0x59   :  { %3602 = vmatprep.subr.bf16.mxu1 %v4383_v0  ;;  %213 = vmatpush1.bf16.msra.mxu0 %v4061_v24  ;;  %v4083_v24 = vld [vmem:[#allocation8 + $0xf0] sm:$0xff]  }
  0x5a   :  { %214 = vmatprep.subr.bf16.mxu0 %v4062_v26  ;;  %v4085_v26 = vld [vmem:[#allocation8 + $0xe0] sm:$0xff]  }
  0x5c   :  { %3603 = vmatpush3.bf16.msra.mxu1 %v4060_v25  ;;  %v4084_v25 = vld [vmem:[#allocation8 + $0xe8] sm:$0xff]  }
  0x5d   :  { %3604 = vmatprep.subr.bf16.mxu1 %v4383_v0  ;;  %215 = vmatpush1.bf16.msra.mxu0 %v4065_v28  ;;  %v4088_v28 = vld [vmem:[#allocation8 + $0xc8] sm:$0xff]  }
  0x5e   :  { %3636 = vmatprep.subr.bf16.mxu0 %v4383_v0 }
  0x60   :  { %3605 = vmatpush3.bf16.msra.mxu1 %v4064_v27  ;;  %233 = vmatmul.mubr.bf16.vlgmr.msra.gmra.mxu0 %v4471_v3  ;;  %v4086_v27 = vld [vmem:[#allocation8 + $0xd8] sm:$0xff]  }
  0x61   :  { %3610 = vmatprep.subr.bf16.mxu1 %v4383_v0  ;;  %3638 = vmatprep.mubr.msk.bf16.mxu0 %vm4384_vm0, %v4383_v0 }
 0x103   :  { %v4494_v30 = vpop.f32.mrf.mxu1 }
 0x105   :  { %v3588_v31 = vpop.f32.mrf.mxu1 }
 0x107   :  { %v4496_v32 = vpop.f32.mrf.mxu1 }
 0x108   :  { %v302_v33 = vpack.c.bf16 %v4496_v32, %v4494_v30 }
 0x109   :  { %v3589_v34 = vpop.f32.mrf.mxu1 }
 0x10a   :  { %3607 = vmatmul.mubr.bf16.vlgmr.msra.gmra.mxu1 %v302_v33 }
 0x10b   :  { %3611 = vmatpush3.bf16.msra.mxu1 %v302_v33  ;;  %3612 = vmatprep.mubr.msk.bf16.mxu1 %vm4384_vm0, %v4383_v0 }
 0x10c   :  { %3616 = vmatprep.subr.bf16.mxu1 %v4383_v0 }
 0x112   :  { %3613 = vmatmul.mubr.msk.bf16.vlgmr.msra.gmra.mxu1 %vm257_vm1, %v4473_v4 }
 0x113   :  { %3617 = vmatpush3.bf16.msra.mxu1 %v4066_v35  ;;  %3632 = vmatprep.mubr.msk.bf16.mxu1 %vm4384_vm0, %v4383_v0 }
 0x114   :  { %3618 = vmatprep.subr.bf16.mxu1 %v4383_v0 }
 0x117   :  { %3619 = vmatpush3.bf16.msra.mxu1 %v4067_v36 }
 0x118   :  { %3620 = vmatprep.subr.bf16.mxu1 %v4383_v0 }
 0x11b   :  { %3621 = vmatpush3.bf16.msra.mxu1 %v4068_v37 }
 0x11c   :  { %3622 = vmatprep.subr.bf16.mxu1 %v4383_v0 }
 0x11f   :  { %3623 = vmatpush3.bf16.msra.mxu1 %v4069_v38 }
 0x120   :  { %3624 = vmatprep.subr.bf16.mxu1 %v4383_v0 }
 0x123   :  { %3625 = vmatpush3.bf16.msra.mxu1 %v4070_v39 }
 0x124   :  { %3626 = vmatprep.subr.bf16.mxu1 %v4383_v0 }
 0x127   :  { %3627 = vmatpush3.bf16.msra.mxu1 %v4071_v40 }
 0x128   :  { %3628 = vmatprep.subr.bf16.mxu1 %v4383_v0 }
 0x12b   :  { %3629 = vmatpush3.bf16.msra.mxu1 %v4072_v41 }
 0x12c   :  { %3630 = vmatprep.subr.bf16.mxu1 %v4383_v0 }
 0x12f   :  { %3631 = vmatpush3.bf16.msra.mxu1 %v4073_v42 }
 0x130   :  { %3662 = vmatprep.subr.bf16.mxu1 %v4383_v0 }
 0x1ca   :  { %v401_v43 = vpop.f32.mrf.mxu1 }
 0x1cc   :  { %v3608_v44 = vpop.f32.mrf.mxu1 }
 0x1ce   :  { %v404_v45 = vpop.f32.mrf.mxu1 }
 0x1d0   :  { %v3609_v46 = vpop.f32.mrf.mxu1 }
 0x1d1   :  { %v4090_v46 = vld [vmem:[#allocation8 + $0x138] sm:$0xff]  }
 0x1d2   :  { %v444_v47 = vpop.f32.mrf.mxu1 }
 0x1d3   :  { %v451_v49 = vmul.f32 2.0, %v444_v47  ;;  %v4572_v47 = vld [vmem:[#allocation2] sm:$0xff]  }
 0x1d4   :  { %v3614_v48 = vpop.f32.mrf.mxu1 }
 0x1d5   :  { %v4516_v53 = vsub.f32 %v451_v49, %v4465_v1  ;;  %v234_v1 = vpop.f32.mrf.mxu0  ;;  %v4091_v48 = vld [vmem:[#allocation8 + $0x130] sm:$0xff]   ;;  %v4092_v49 = vld [vmem:[#allocation8 + $0x128] sm:$0xff]  }
 0x1d6   :  { %v447_v50 = vpop.f32.mrf.mxu1  ;;  %v408_v3 = vadd.f32 %v401_v43, %v234_v1  ;;  %v4110_v1 = vld [vmem:[#allocation7 + $0xb0] ss:$8 sps:$4 sm:$0xff]  }
 0x1d7   :  { %v452_v51 = vmul.f32 2.0, %v447_v50  ;;  %v4093_v50 = vld [vmem:[#allocation8 + $0x120] sm:$0xff]  }
 0x1d8   :  { %v3615_v52 = vpop.f32.mrf.mxu1 }
 0x1d9   :  { %v4519_v54 = vsub.f32 %v452_v51, %v4467_v2  ;;  %v4538_v2 = vpop.f32.mrf.mxu0  ;;  %v4094_v51 = vld [vmem:[#allocation8 + $0x118] sm:$0xff]   ;;  %v4095_v52 = vld [vmem:[#allocation8 + $0x110] sm:$0xff]  }
 0x1db   :  { %v455_v55 = vpack.c.bf16 %v4519_v54, %v4516_v53  ;;  %v238_v5 = vpop.f32.mrf.mxu0 }
 0x1dc   :  { %v409_v10 = vadd.f32 %v404_v45, %v238_v5 }
 0x1dd   :  { %3633 = vmatmul.mubr.bf16.vlgmr.msra.gmra.mxu1 %v455_v55  ;;  %3637 = vmatpush3.bf16.msra.mxu0 %v455_v55  ;;  %v4540_v7 = vpop.f32.mrf.mxu0  ;;  %v4098_v55 = vld [vmem:[#allocation7 + $0xf0] ss:$8 sps:$4 sm:$0xff]  }
 0x1de   :  { %3642 = vmatprep.subr.bf16.mxu0 %v4383_v0  ;;  %3664 = vmatprep.mubr.msk.bf16.mxu1 %vm4384_vm0, %v4383_v0 }
 0x1e0   :  { %3639 = vmatmul.mubr.msk.bf16.vlgmr.msra.gmra.mxu0 %vm257_vm1, %v4473_v4 }
 0x1e1   :  { %3643 = vmatpush3.bf16.msra.mxu0 %v4074_v56  ;;  %3658 = vmatprep.mubr.msk.bf16.mxu0 %vm4384_vm0, %v4383_v0  ;;  %v4100_v56 = vld [vmem:[#allocation7 + $0xf4] ss:$8 sps:$4 sm:$0xff]  }
 0x1e2   :  { %3644 = vmatprep.subr.bf16.mxu0 %v4383_v0 }
 0x1e5   :  { %3645 = vmatpush3.bf16.msra.mxu0 %v4075_v57  ;;  %v4103_v57 = vld [vmem:[#allocation7 + $0xe4] ss:$8 sps:$4 sm:$0xff]  }
 0x1e6   :  { %3646 = vmatprep.subr.bf16.mxu0 %v4383_v0 }
 0x1e9   :  { %3647 = vmatpush3.bf16.msra.mxu0 %v4076_v58  ;;  %v4101_v58 = vld [vmem:[#allocation7 + $0xe0] ss:$8 sps:$4 sm:$0xff]  }
 0x1ea   :  { %3648 = vmatprep.subr.bf16.mxu0 %v4383_v0 }
 0x1ed   :  { %3649 = vmatpush3.bf16.msra.mxu0 %v4077_v59  ;;  %v4106_v59 = vld [vmem:[#allocation7 + $0xd4] ss:$8 sps:$4 sm:$0xff]  }
 0x1ee   :  { %3650 = vmatprep.subr.bf16.mxu0 %v4383_v0 }
 0x1f1   :  { %3651 = vmatpush3.bf16.msra.mxu0 %v4078_v60  ;;  %v4104_v60 = vld [vmem:[#allocation7 + $0xd0] ss:$8 sps:$4 sm:$0xff]  }
 0x1f2   :  { %3652 = vmatprep.subr.bf16.mxu0 %v4383_v0 }
 0x1f5   :  { %3653 = vmatpush3.bf16.msra.mxu0 %v4079_v61  ;;  %v4109_v61 = vld [vmem:[#allocation7 + $0xc4] ss:$8 sps:$4 sm:$0xff]  }
 0x1f6   :  { %3654 = vmatprep.subr.bf16.mxu0 %v4383_v0 }
 0x1f9   :  { %3655 = vmatpush3.bf16.msra.mxu0 %v4080_v62  ;;  %v4107_v62 = vld [vmem:[#allocation7 + $0xc0] ss:$8 sps:$4 sm:$0xff]  }
 0x1fa   :  { %3656 = vmatprep.subr.bf16.mxu0 %v4383_v0 }
 0x1fd   :  { %3657 = vmatpush3.bf16.msra.mxu0 %v4081_v63  ;;  %v4112_v63 = vld [vmem:[#allocation7 + $0xb4] ss:$8 sps:$4 sm:$0xff]  }
 0x1fe   :  { %3688 = vmatprep.subr.bf16.mxu0 %v4383_v0 }
 0x29d   :  { %v555_v6 = vpop.f32.mrf.mxu1 }
 0x29e   :  { %v562_v8 = vadd.f32 %v555_v6, %v408_v3 }
 0x29f   :  { %v3634_v9 = vpop.f32.mrf.mxu1 }
 0x2a0   :  { %v598_v11 = vpop.f32.mrf.mxu0 }
 0x2a1   :  { %v558_v12 = vpop.f32.mrf.mxu1  ;;  %v605_v15 = vmul.f32 2.0, %v598_v11 }
 0x2a2   :  { %v563_v13 = vadd.f32 %v558_v12, %v409_v10  ;;  %v3640_v14 = vpop.f32.mrf.mxu0 }
 0x2a3   :  { %v3635_v16 = vpop.f32.mrf.mxu1  ;;  %v4543_v20 = vsub.f32 %v605_v15, %v4494_v30  ;;  %v4089_v30 = vld [vmem:[#allocation8 + $0xc0] sm:$0xff]  }
 0x2a4   :  { %v601_v17 = vpop.f32.mrf.mxu0 }
 0x2a5   :  { %v606_v18 = vmul.f32 2.0, %v601_v17 }
 0x2a6   :  { %v3641_v19 = vpop.f32.mrf.mxu0 }
 0x2a7   :  { %v4546_v21 = vsub.f32 %v606_v18, %v4496_v32 }
 0x2a9   :  { %v609_v22 = vpack.c.bf16 %v4546_v21, %v4543_v20 }
 0x2ab   :  { %3659 = vmatmul.mubr.bf16.vlgmr.msra.gmra.mxu0 %v609_v22  ;;  %3663 = vmatpush3.bf16.msra.mxu1 %v609_v22  ;;  %v4115_v22 = vld [vmem:[#allocation7 + $0xa4] ss:$8 sps:$4 sm:$0xff]  }
 0x2ac   :  { %3668 = vmatprep.subr.bf16.mxu1 %v4383_v0  ;;  %3690 = vmatprep.mubr.msk.bf16.mxu0 %vm4384_vm0, %v4383_v0 }
 0x2ae   :  { %3665 = vmatmul.mubr.msk.bf16.vlgmr.msra.gmra.mxu1 %vm257_vm1, %v4473_v4  ;;  %v4087_v4 = vld [vmem:[#allocation8 + $0xd0] sm:$0xff]  }
 0x2af   :  { %3669 = vmatpush3.bf16.msra.mxu1 %v4082_v23  ;;  %3684 = vmatprep.mubr.msk.bf16.mxu1 %vm4384_vm0, %v4383_v0  ;;  %v4113_v23 = vld [vmem:[#allocation7 + $0xa0] ss:$8 sps:$4 sm:$0xff]  }
 0x2b0   :  { %3670 = vmatprep.subr.bf16.mxu1 %v4383_v0 }
 0x2b3   :  { %3671 = vmatpush3.bf16.msra.mxu1 %v4083_v24  ;;  %v4118_v24 = vld [vmem:[#allocation7 + $0x94] ss:$8 sps:$4 sm:$0xff]  }
 0x2b4   :  { %3672 = vmatprep.subr.bf16.mxu1 %v4383_v0 }
 0x2b7   :  { %3673 = vmatpush3.bf16.msra.mxu1 %v4084_v25  ;;  %v4116_v25 = vld [vmem:[#allocation7 + $0x90] ss:$8 sps:$4 sm:$0xff]  }
 0x2b8   :  { %3674 = vmatprep.subr.bf16.mxu1 %v4383_v0 }
 0x2bb   :  { %3675 = vmatpush3.bf16.msra.mxu1 %v4085_v26  ;;  %v4121_v26 = vld [vmem:[#allocation7 + $0x84] ss:$8 sps:$4 sm:$0xff]  }
 0x2bc   :  { %3676 = vmatprep.subr.bf16.mxu1 %v4383_v0 }
 0x2bf   :  { %3677 = vmatpush3.bf16.msra.mxu1 %v4086_v27  ;;  %v4119_v27 = vld [vmem:[#allocation7 + $0x80] ss:$8 sps:$4 sm:$0xff]  }
 0x2c0   :  { %3678 = vmatprep.subr.bf16.mxu1 %v4383_v0 }
 0x2c3   :  { %3679 = vmatpush3.bf16.msra.mxu1 %v4087_v4 }
 0x2c4   :  { %3680 = vmatprep.subr.bf16.mxu1 %v4383_v0 }
 0x2c7   :  { %3681 = vmatpush3.bf16.msra.mxu1 %v4088_v28  ;;  %v3203_v28 = vld [vmem:[%s4883_s5] ss:$0 sm:$0xff] }
 0x2c8   :  { %3682 = vmatprep.subr.bf16.mxu1 %v4383_v0 }
 0x2cb   :  { %3683 = vmatpush3.bf16.msra.mxu1 %v4089_v30 }
 0x2cc   :  { %1137 = vmatprep.subr.bf16.mxu1 %v4100_v56  ;;  %v4131_v56 = vld [vmem:[#allocation8 + $0x1b0] sm:$0xff]  }
 0x36b   :  { %v709_v31 = vpop.f32.mrf.mxu0 }
 0x36c   :  { %v4564_v32 = vadd.f32 %v709_v31, %v562_v8 }
 0x36d   :  { %v3660_v33 = vpop.f32.mrf.mxu0 }
 0x36e   :  { %v752_v34 = vpop.f32.mrf.mxu1  ;;  %v250_v33 = vadd.f32 %v3203_v28, %v4538_v2  ;;  %v4123_v2 = vld [vmem:[#allocation8 + $0x170] sm:$0xff]  }
 0x36f   :  { %v712_v35 = vpop.f32.mrf.mxu0  ;;  %v759_v38 = vmul.f32 2.0, %v752_v34 }
 0x370   :  { %v4566_v36 = vadd.f32 %v712_v35, %v563_v13  ;;  %v3666_v37 = vpop.f32.mrf.mxu1 }
 0x371   :  { %v3661_v39 = vpop.f32.mrf.mxu0  ;;  %v761_v43 = vsub.f32 %v759_v38, %v4516_v53  ;;  %v4096_v53 = vld [vmem:[#allocation8 + $0x108] sm:$0xff]  }
 0x372   :  { %v755_v40 = vpop.f32.mrf.mxu1  ;;  %v251_v39 = vadd.f32 %v3203_v28, %v4540_v7  ;;  %v4124_v7 = vld [vmem:[#allocation8 + $0x168] sm:$0xff]  }
 0x373   :  { %v760_v41 = vmul.f32 2.0, %v755_v40 }
 0x374   :  { %v3667_v42 = vpop.f32.mrf.mxu1 }
 0x375   :  { %v762_v44 = vsub.f32 %v760_v41, %v4519_v54  ;;  %v4097_v54 = vld [vmem:[#allocation8 + $0x100] sm:$0xff]  }
 0x377   :  { %v763_v45 = vpack.c.bf16 %v762_v44, %v761_v43  ;;  %v4122_v43 = vld [vmem:[#allocation8 + $0x178] sm:$0xff]   ;;  %v4125_v44 = vld [vmem:[#allocation8 + $0x160] sm:$0xff]  }
 0x379   :  { %3685 = vmatmul.mubr.bf16.vlgmr.msra.gmra.mxu1 %v763_v45  ;;  %3689 = vmatpush3.bf16.msra.mxu0 %v763_v45  ;;  %v4126_v45 = vld [vmem:[#allocation8 + $0x158] sm:$0xff]  }
 0x37a   :  { %3694 = vmatprep.subr.bf16.mxu0 %v4383_v0  ;;  %1169 = vmatprep.mubr.bf16.mxu1 %v4385_v29 }
 0x37b   :  { %1138 = vmatpush1.bf16.msra.mxu1 %v4098_v55  ;;  %v4130_v55 = vld [vmem:[#allocation8 + $0x1b8] sm:$0xff]  }
 0x37c   :  { %3691 = vmatmul.mubr.msk.bf16.vlgmr.msra.gmra.mxu0 %vm257_vm1, %v4572_v47  ;;  %1139 = vmatprep.subr.bf16.mxu1 %v4103_v57  ;;  %v4132_v57 = vld [vmem:[#allocation8 + $0x1a8] sm:$0xff]  }
 0x37d   :  { %3695 = vmatpush3.bf16.msra.mxu0 %v4090_v46  ;;  %3710 = vmatprep.mubr.msk.bf16.mxu0 %vm4384_vm0, %v4383_v0  ;;  %v4127_v46 = vld [vmem:[#allocation8 + $0x150] sm:$0xff]  }
 0x37e   :  { %3696 = vmatprep.subr.bf16.mxu0 %v4383_v0 }
 0x37f   :  { %1140 = vmatpush1.bf16.msra.mxu1 %v4101_v58  ;;  %v4133_v58 = vld [vmem:[#allocation8 + $0x1a0] sm:$0xff]  }
 0x380   :  { %1141 = vmatprep.subr.bf16.mxu1 %v4106_v59  ;;  %v4134_v59 = vld [vmem:[#allocation8 + $0x198] sm:$0xff]  }
 0x381   :  { %3697 = vmatpush3.bf16.msra.mxu0 %v4091_v48  ;;  %v4128_v48 = vld [vmem:[#allocation8 + $0x148] sm:$0xff]  }
 0x382   :  { %3698 = vmatprep.subr.bf16.mxu0 %v4383_v0 }
 0x383   :  { %1142 = vmatpush1.bf16.msra.mxu1 %v4104_v60  ;;  %v4135_v60 = vld [vmem:[#allocation8 + $0x190] sm:$0xff]  }
 0x384   :  { %1143 = vmatprep.subr.bf16.mxu1 %v4109_v61  ;;  %v4136_v61 = vld [vmem:[#allocation8 + $0x188] sm:$0xff]  }
 0x385   :  { %3699 = vmatpush3.bf16.msra.mxu0 %v4092_v49  ;;  %v4129_v49 = vld [vmem:[#allocation8 + $0x140] sm:$0xff]  }
 0x386   :  { %3700 = vmatprep.subr.bf16.mxu0 %v4383_v0 }
 0x387   :  { %1144 = vmatpush1.bf16.msra.mxu1 %v4107_v62  ;;  %v4137_v62 = vld [vmem:[#allocation8 + $0x180] sm:$0xff]  }
 0x388   :  { %1145 = vmatprep.subr.bf16.mxu1 %v4112_v63 }
 0x389   :  { %3701 = vmatpush3.bf16.msra.mxu0 %v4093_v50 }
 0x38a   :  { %3702 = vmatprep.subr.bf16.mxu0 %v4383_v0 }
 0x38b   :  { %1146 = vmatpush1.bf16.msra.mxu1 %v4110_v1 }
 0x38c   :  { %1147 = vmatprep.subr.bf16.mxu1 %v4115_v22  ;;  %v4138_v22 = vld [vmem:[#allocation8 + $0x1f8] sm:$0xff]  }
 0x38d   :  { %3703 = vmatpush3.bf16.msra.mxu0 %v4094_v51 }
 0x38e   :  { %3704 = vmatprep.subr.bf16.mxu0 %v4383_v0 }
 0x38f   :  { %1148 = vmatpush1.bf16.msra.mxu1 %v4113_v23  ;;  %v4139_v23 = vld [vmem:[#allocation8 + $0x1f0] sm:$0xff]  }
 0x390   :  { %1149 = vmatprep.subr.bf16.mxu1 %v4118_v24  ;;  %v4140_v24 = vld [vmem:[#allocation8 + $0x1e8] sm:$0xff]  }
 0x391   :  { %3705 = vmatpush3.bf16.msra.mxu0 %v4095_v52 }
 0x392   :  { %3706 = vmatprep.subr.bf16.mxu0 %v4383_v0 }
 0x393   :  { %1150 = vmatpush1.bf16.msra.mxu1 %v4116_v25  ;;  %v4141_v25 = vld [vmem:[#allocation8 + $0x1e0] sm:$0xff]  }
 0x394   :  { %1151 = vmatprep.subr.bf16.mxu1 %v4121_v26  ;;  %v4142_v26 = vld [vmem:[#allocation8 + $0x1d8] sm:$0xff]  }
 0x395   :  { %3707 = vmatpush3.bf16.msra.mxu0 %v4096_v53 }
 0x396   :  { %3708 = vmatprep.subr.bf16.mxu0 %v4383_v0 }
 0x397   :  { %1152 = vmatpush1.bf16.msra.mxu1 %v4119_v27  ;;  %v4143_v27 = vld [vmem:[#allocation8 + $0x1d0] sm:$0xff]  }
 0x398   :  { %3740 = vmatprep.subr.bf16.mxu1 %v4383_v0 }
 0x399   :  { %3709 = vmatpush3.bf16.msra.mxu0 %v4097_v54 }
 0x39a   :  { %3714 = vmatprep.subr.bf16.mxu0 %v4383_v0 }
 0x439   :  { %v863_v3 = vpop.f32.mrf.mxu1 }
 0x43a   :  { %v870_v5 = vadd.f32 %v863_v3, %v4564_v32 }
 0x43b   :  { %v3686_v6 = vpop.f32.mrf.mxu1 }
 0x43c   :  { %v906_v8 = vpop.f32.mrf.mxu0 }
 0x43d   :  { %v866_v9 = vpop.f32.mrf.mxu1  ;;  %v913_v12 = vmul.f32 2.0, %v906_v8 }
 0x43e   :  { %v871_v10 = vadd.f32 %v866_v9, %v4566_v36  ;;  %v3692_v11 = vpop.f32.mrf.mxu0 }
 0x43f   :  { %v3687_v13 = vpop.f32.mrf.mxu1  ;;  %v915_v17 = vsub.f32 %v913_v12, %v4543_v20 }
 0x440   :  { %v909_v14 = vpop.f32.mrf.mxu0 }
 0x441   :  { %v914_v15 = vmul.f32 2.0, %v909_v14 }
 0x442   :  { %v3693_v16 = vpop.f32.mrf.mxu0 }
 0x443   :  { %v916_v18 = vsub.f32 %v914_v15, %v4546_v21  ;;  %v3250_v21 = vld [vmem:[%s4882_s4] ss:$0 sm:$0xff] }
 0x445   :  { %v917_v19 = vpack.c.bf16 %v916_v18, %v915_v17 }
 0x447   :  { %3711 = vmatmul.mubr.bf16.vlgmr.msra.gmra.mxu0 %v917_v19 }
 0x448   :  { %3716 = vmatprep.mubr.msk.bf16.mxu0 %vm4384_vm0, %v4383_v0 }
 0x507   :  { %v1017_v20 = vpop.f32.mrf.mxu0 }
 0x508   :  { %v1024_v4 = vadd.f32 %v1017_v20, %v870_v5  ;;  %v4144_v20 = vld [vmem:[#allocation8 + $0x1c8] sm:$0xff]  }
 0x509   :  { %v3712_v30 = vpop.f32.mrf.mxu0 }
 0x50a   :  { %v1033_v31 = vadd.f32 %v3250_v21, %v1024_v4 }
 0x50b   :  { %v1020_v32 = vpop.f32.mrf.mxu0 }
 0x50c   :  { %v1035_v34 = vmax.f32 %v1033_v31, 0.0  ;;  %v1025_v35 = vadd.f32 %v1020_v32, %v871_v10 }
 0x50d   :  { %v3713_v36 = vpop.f32.mrf.mxu0 }
 0x50e   :  { %v4600_v37 = vadd.f32 %v1035_v34, %v250_v33  ;;  %v1034_v38 = vadd.f32 %v3250_v21, %v1025_v35  ;;  %v4145_v21 = vld [vmem:[#allocation8 + $0x1c0] sm:$0xff]  }
 0x510   :  { %v1036_v40 = vmax.f32 %v1034_v38, 0.0 }
 0x512   :  { %v4603_v41 = vadd.f32 %v1036_v40, %v251_v39 }
 0x514   :  { %v1039_v42 = vpack.c.bf16 %v4603_v41, %v4600_v37 }
 0x516   :  { %1170 = vmatmul.mubr.bf16.vlgmr.msra.gmra.mxu1 %v1039_v42  ;;  %3715 = vmatpush3.bf16.msra.mxu0 %v1039_v42 }
 0x517   :  { %3720 = vmatprep.subr.bf16.mxu0 %v4383_v0  ;;  %3742 = vmatprep.mubr.msk.bf16.mxu1 %vm4384_vm0, %v4383_v0 }
 0x519   :  { %3717 = vmatmul.mubr.msk.bf16.vlgmr.msra.gmra.mxu0 %vm257_vm1, %v4572_v47 }
 0x51a   :  { %3721 = vmatpush3.bf16.msra.mxu0 %v4122_v43  ;;  %3736 = vmatprep.mubr.msk.bf16.mxu0 %vm4384_vm0, %v4383_v0 }
 0x51b   :  { %3722 = vmatprep.subr.bf16.mxu0 %v4383_v0 }
 0x51e   :  { %3723 = vmatpush3.bf16.msra.mxu0 %v4123_v2 }
 0x51f   :  { %3724 = vmatprep.subr.bf16.mxu0 %v4383_v0 }
 0x522   :  { %3725 = vmatpush3.bf16.msra.mxu0 %v4124_v7  ;;  %v4146_v7 = vld [vmem:[#allocation8 + $0x238] sm:$0xff]  }
 0x523   :  { %3726 = vmatprep.subr.bf16.mxu0 %v4383_v0 }
 0x526   :  { %3727 = vmatpush3.bf16.msra.mxu0 %v4125_v44  ;;  %v4147_v44 = vld [vmem:[#allocation8 + $0x230] sm:$0xff]  }
 0x527   :  { %3728 = vmatprep.subr.bf16.mxu0 %v4383_v0 }
 0x52a   :  { %3729 = vmatpush3.bf16.msra.mxu0 %v4126_v45  ;;  %v4148_v45 = vld [vmem:[#allocation8 + $0x228] sm:$0xff]  }
 0x52b   :  { %3730 = vmatprep.subr.bf16.mxu0 %v4383_v0 }
 0x52e   :  { %3731 = vmatpush3.bf16.msra.mxu0 %v4127_v46  ;;  %v4149_v46 = vld [vmem:[#allocation8 + $0x220] sm:$0xff]  }
 0x52f   :  { %3732 = vmatprep.subr.bf16.mxu0 %v4383_v0 }
 0x532   :  { %3733 = vmatpush3.bf16.msra.mxu0 %v4128_v48  ;;  %v4150_v48 = vld [vmem:[#allocation8 + $0x218] sm:$0xff]  }
 0x533   :  { %3734 = vmatprep.subr.bf16.mxu0 %v4383_v0 }
 0x536   :  { %3735 = vmatpush3.bf16.msra.mxu0 %v4129_v49  ;;  %v4151_v49 = vld [vmem:[#allocation8 + $0x210] sm:$0xff]  }
 0x537   :  { %3766 = vmatprep.subr.bf16.mxu0 %v4383_v0 }
 0x5d6   :  { %v1171_v63 = vpop.f32.mrf.mxu1 }
 0x5d8   :  { %v4643_v1 = vpop.f32.mrf.mxu1 }
 0x5d9   :  { %v4622_v50 = vpop.f32.mrf.mxu0 }
 0x5da   :  { %v1175_v3 = vpop.f32.mrf.mxu1 }
 0x5db   :  { %v3718_v51 = vpop.f32.mrf.mxu0 }
 0x5dc   :  { %v4645_v6 = vpop.f32.mrf.mxu1  ;;  %v4153_v51 = vld [vmem:[#allocation8 + $0x200] sm:$0xff]  }
 0x5dd   :  { %v4624_v52 = vpop.f32.mrf.mxu0 }
 0x5de   :  { %v1231_v53 = vpack.c.bf16 %v4624_v52, %v4622_v50 }
 0x5df   :  { %v3719_v54 = vpop.f32.mrf.mxu0 }
 0x5e0   :  { %3737 = vmatmul.mubr.bf16.vlgmr.msra.gmra.mxu0 %v1231_v53  ;;  %3741 = vmatpush3.bf16.msra.mxu1 %v1231_v53 }
 0x5e1   :  { %3746 = vmatprep.subr.bf16.mxu1 %v4383_v0  ;;  %3768 = vmatprep.mubr.msk.bf16.mxu0 %vm4384_vm0, %v4383_v0 }
 0x5e3   :  { %3743 = vmatmul.mubr.msk.bf16.vlgmr.msra.gmra.mxu1 %vm257_vm1, %v4572_v47 }
 0x5e4   :  { %3747 = vmatpush3.bf16.msra.mxu1 %v4130_v55  ;;  %3762 = vmatprep.mubr.msk.bf16.mxu1 %vm4384_vm0, %v4383_v0 }
 0x5e5   :  { %3748 = vmatprep.subr.bf16.mxu1 %v4383_v0 }
 0x5e8   :  { %3749 = vmatpush3.bf16.msra.mxu1 %v4131_v56 }
 0x5e9   :  { %3750 = vmatprep.subr.bf16.mxu1 %v4383_v0 }
 0x5ec   :  { %3751 = vmatpush3.bf16.msra.mxu1 %v4132_v57 }
 0x5ed   :  { %3752 = vmatprep.subr.bf16.mxu1 %v4383_v0 }
 0x5f0   :  { %3753 = vmatpush3.bf16.msra.mxu1 %v4133_v58 }
 0x5f1   :  { %3754 = vmatprep.subr.bf16.mxu1 %v4383_v0 }
 0x5f4   :  { %3755 = vmatpush3.bf16.msra.mxu1 %v4134_v59 }
 0x5f5   :  { %3756 = vmatprep.subr.bf16.mxu1 %v4383_v0 }
 0x5f8   :  { %3757 = vmatpush3.bf16.msra.mxu1 %v4135_v60 }
 0x5f9   :  { %3758 = vmatprep.subr.bf16.mxu1 %v4383_v0 }
 0x5fc   :  { %3759 = vmatpush3.bf16.msra.mxu1 %v4136_v61 }
 0x5fd   :  { %3760 = vmatprep.subr.bf16.mxu1 %v4383_v0 }
 0x600   :  { %3761 = vmatpush3.bf16.msra.mxu1 %v4137_v62 }
 0x601   :  { %3792 = vmatprep.subr.bf16.mxu1 %v4383_v0 }
 0x6a0   :  { %v1331_v5 = vpop.f32.mrf.mxu0 }
 0x6a1   :  { %v1338_v4 = vadd.f32 %v1331_v5, %v1171_v63 }
 0x6a2   :  { %v3738_v8 = vpop.f32.mrf.mxu0 }
 0x6a3   :  { %v1374_v9 = vpop.f32.mrf.mxu1 }
 0x6a4   :  { %v1334_v10 = vpop.f32.mrf.mxu0  ;;  %v1381_v12 = vmul.f32 2.0, %v1374_v9  ;;  %v4154_v9 = vld [vmem:[#allocation8 + $0x278] sm:$0xff]  }
 0x6a5   :  { %v3744_v11 = vpop.f32.mrf.mxu1  ;;  %v1339_v32 = vadd.f32 %v1334_v10, %v1175_v3  ;;  %v4155_v10 = vld [vmem:[#allocation8 + $0x270] sm:$0xff]  }
 0x6a6   :  { %v3739_v13 = vpop.f32.mrf.mxu0  ;;  %v4648_v17 = vsub.f32 %v1381_v12, %v4600_v37  ;;  %v4156_v11 = vld [vmem:[#allocation8 + $0x268] sm:$0xff]   ;;  %v4157_v12 = vld [vmem:[#allocation8 + $0x260] sm:$0xff]  }
 0x6a7   :  { %v1377_v14 = vpop.f32.mrf.mxu1  ;;  %v4159_v13 = vld [vmem:[#allocation8 + $0x250] sm:$0xff]  }
 0x6a8   :  { %v1382_v15 = vmul.f32 2.0, %v1377_v14  ;;  %v4160_v14 = vld [vmem:[#allocation8 + $0x248] sm:$0xff]  }
 0x6a9   :  { %v3745_v16 = vpop.f32.mrf.mxu1 }
 0x6aa   :  { %v4651_v18 = vsub.f32 %v1382_v15, %v4603_v41  ;;  %v4161_v15 = vld [vmem:[#allocation8 + $0x240] sm:$0xff]   ;;  %v4162_v16 = vld [vmem:[#allocation7 + $0x170] ss:$8 sps:$4 sm:$0xff]  }
 0x6ac   :  { %v1385_v19 = vpack.c.bf16 %v4651_v18, %v4648_v17 }
 0x6ae   :  { %3763 = vmatmul.mubr.bf16.vlgmr.msra.gmra.mxu1 %v1385_v19  ;;  %3767 = vmatpush3.bf16.msra.mxu0 %v1385_v19  ;;  %v4165_v19 = vld [vmem:[#allocation7 + $0x160] ss:$8 sps:$4 sm:$0xff]  }
 0x6af   :  { %3772 = vmatprep.subr.bf16.mxu0 %v4383_v0  ;;  %3794 = vmatprep.mubr.msk.bf16.mxu1 %vm4384_vm0, %v4383_v0 }
 0x6b1   :  { %3769 = vmatmul.mubr.msk.bf16.vlgmr.msra.gmra.mxu0 %vm257_vm1, %v4572_v47 }
 0x6b2   :  { %3773 = vmatpush3.bf16.msra.mxu0 %v4138_v22  ;;  %3788 = vmatprep.mubr.msk.bf16.mxu0 %vm4384_vm0, %v4383_v0  ;;  %v4170_v22 = vld [vmem:[#allocation7 + $0x154] ss:$8 sps:$4 sm:$0xff]  }
 0x6b3   :  { %3774 = vmatprep.subr.bf16.mxu0 %v4383_v0 }
 0x6b6   :  { %3775 = vmatpush3.bf16.msra.mxu0 %v4139_v23  ;;  %v4168_v23 = vld [vmem:[#allocation7 + $0x150] ss:$8 sps:$4 sm:$0xff]  }
 0x6b7   :  { %3776 = vmatprep.subr.bf16.mxu0 %v4383_v0 }
 0x6ba   :  { %3777 = vmatpush3.bf16.msra.mxu0 %v4140_v24  ;;  %v4173_v24 = vld [vmem:[#allocation7 + $0x144] ss:$8 sps:$4 sm:$0xff]  }
 0x6bb   :  { %3778 = vmatprep.subr.bf16.mxu0 %v4383_v0 }
 0x6be   :  { %3779 = vmatpush3.bf16.msra.mxu0 %v4141_v25  ;;  %v4171_v25 = vld [vmem:[#allocation7 + $0x140] ss:$8 sps:$4 sm:$0xff]  }
 0x6bf   :  { %3780 = vmatprep.subr.bf16.mxu0 %v4383_v0 }
 0x6c2   :  { %3781 = vmatpush3.bf16.msra.mxu0 %v4142_v26  ;;  %v4176_v26 = vld [vmem:[#allocation7 + $0x134] ss:$8 sps:$4 sm:$0xff]  }
 0x6c3   :  { %3782 = vmatprep.subr.bf16.mxu0 %v4383_v0 }
 0x6c6   :  { %3783 = vmatpush3.bf16.msra.mxu0 %v4143_v27  ;;  %v4174_v27 = vld [vmem:[#allocation7 + $0x130] ss:$8 sps:$4 sm:$0xff]  }
 0x6c7   :  { %3784 = vmatprep.subr.bf16.mxu0 %v4383_v0 }
 0x6ca   :  { %3785 = vmatpush3.bf16.msra.mxu0 %v4144_v20 }
 0x6cb   :  { %3786 = vmatprep.subr.bf16.mxu0 %v4383_v0 }
 0x6ce   :  { %3787 = vmatpush3.bf16.msra.mxu0 %v4145_v21 }
 0x6cf   :  { %3818 = vmatprep.subr.bf16.mxu0 %v4383_v0 }
 0x76e   :  { %v1485_v28 = vpop.f32.mrf.mxu1 }
 0x76f   :  { %v1492_v30 = vadd.f32 %v1485_v28, %v1338_v4 }
 0x770   :  { %v3764_v31 = vpop.f32.mrf.mxu1 }
 0x771   :  { %v1528_v33 = vpop.f32.mrf.mxu0 }
 0x772   :  { %v1488_v34 = vpop.f32.mrf.mxu1  ;;  %v1535_v37 = vmul.f32 2.0, %v1528_v33 }
 0x773   :  { %v1493_v35 = vadd.f32 %v1488_v34, %v1339_v32  ;;  %v3770_v36 = vpop.f32.mrf.mxu0 }
 0x774   :  { %v3765_v38 = vpop.f32.mrf.mxu1  ;;  %v4671_v42 = vsub.f32 %v1535_v37, %v4622_v50  ;;  %v4152_v50 = vld [vmem:[#allocation8 + $0x208] sm:$0xff]  }
 0x775   :  { %v1531_v39 = vpop.f32.mrf.mxu0 }
 0x776   :  { %v1536_v40 = vmul.f32 2.0, %v1531_v39 }
 0x777   :  { %v3771_v41 = vpop.f32.mrf.mxu0 }
 0x778   :  { %v4674_v43 = vsub.f32 %v1536_v40, %v4624_v52  ;;  %v4179_v41 = vld [vmem:[#allocation7 + $0x124] ss:$8 sps:$4 sm:$0xff]  }
 0x77a   :  { %v1539_v2 = vpack.c.bf16 %v4674_v43, %v4671_v42 }
 0x77c   :  { %3789 = vmatmul.mubr.bf16.vlgmr.msra.gmra.mxu0 %v1539_v2  ;;  %3793 = vmatpush3.bf16.msra.mxu1 %v1539_v2  ;;  %v4177_v2 = vld [vmem:[#allocation7 + $0x120] ss:$8 sps:$4 sm:$0xff]  }
 0x77d   :  { %3798 = vmatprep.subr.bf16.mxu1 %v4383_v0  ;;  %3820 = vmatprep.mubr.msk.bf16.mxu0 %vm4384_vm0, %v4383_v0 }
 0x77f   :  { %3795 = vmatmul.mubr.msk.bf16.vlgmr.msra.gmra.mxu1 %vm257_vm1, %v4572_v47 }
 0x780   :  { %3799 = vmatpush3.bf16.msra.mxu1 %v4146_v7  ;;  %3814 = vmatprep.mubr.msk.bf16.mxu1 %vm4384_vm0, %v4383_v0  ;;  %v4182_v7 = vld [vmem:[#allocation7 + $0x114] ss:$8 sps:$4 sm:$0xff]  }
 0x781   :  { %3800 = vmatprep.subr.bf16.mxu1 %v4383_v0 }
 0x784   :  { %3801 = vmatpush3.bf16.msra.mxu1 %v4147_v44  ;;  %v4180_v44 = vld [vmem:[#allocation7 + $0x110] ss:$8 sps:$4 sm:$0xff]  }
 0x785   :  { %3802 = vmatprep.subr.bf16.mxu1 %v4383_v0 }
 0x788   :  { %3803 = vmatpush3.bf16.msra.mxu1 %v4148_v45  ;;  %v4185_v45 = vld [vmem:[#allocation7 + $0x104] ss:$8 sps:$4 sm:$0xff]  }
 0x789   :  { %3804 = vmatprep.subr.bf16.mxu1 %v4383_v0 }
 0x78c   :  { %3805 = vmatpush3.bf16.msra.mxu1 %v4149_v46  ;;  %v4183_v46 = vld [vmem:[#allocation7 + $0x100] ss:$8 sps:$4 sm:$0xff]  }
 0x78d   :  { %3806 = vmatprep.subr.bf16.mxu1 %v4383_v0 }
 0x790   :  { %3807 = vmatpush3.bf16.msra.mxu1 %v4150_v48 }
 0x791   :  { %3808 = vmatprep.subr.bf16.mxu1 %v4383_v0 }
 0x794   :  { %3809 = vmatpush3.bf16.msra.mxu1 %v4151_v49  ;;  %v3268_v49 = vld [vmem:[%s4883_s5 + $0x1] ss:$0 sm:$0xff] }
 0x795   :  { %3810 = vmatprep.subr.bf16.mxu1 %v4383_v0 }
 0x798   :  { %3811 = vmatpush3.bf16.msra.mxu1 %v4152_v50 }
 0x799   :  { %3812 = vmatprep.subr.bf16.mxu1 %v4383_v0 }
 0x79c   :  { %3813 = vmatpush3.bf16.msra.mxu1 %v4153_v51 }
 0x83c   :  { %v1639_v52 = vpop.f32.mrf.mxu0 }
 0x83d   :  { %v4692_v53 = vadd.f32 %v1639_v52, %v1492_v30 }
 0x83e   :  { %v3790_v54 = vpop.f32.mrf.mxu0 }
 0x83f   :  { %v1682_v55 = vpop.f32.mrf.mxu1 }
 0x840   :  { %v1642_v56 = vpop.f32.mrf.mxu0  ;;  %v1689_v59 = vmul.f32 2.0, %v1682_v55 }
 0x841   :  { %v4694_v57 = vadd.f32 %v1642_v56, %v1493_v35  ;;  %v3796_v58 = vpop.f32.mrf.mxu1 }
 0x842   :  { %v3791_v60 = vpop.f32.mrf.mxu0  ;;  %v1691_v3 = vsub.f32 %v1689_v59, %v4648_v17  ;;  %v4164_v17 = vld [vmem:[#allocation7 + $0x174] ss:$8 sps:$4 sm:$0xff]   ;;  %v1189_v59 = vadd.f32 %v3268_v49, %v4645_v6  ;;  %v4188_v6 = vld [vmem:[#allocation8 + $0x2a8] sm:$0xff]  }
 0x843   :  { %v1685_v61 = vpop.f32.mrf.mxu1  ;;  %2068 = vmatprep.subr.bf16.mxu1 %v4164_v17  ;;  %v4196_v17 = vld [vmem:[#allocation8 + $0x2e8] sm:$0xff]  }
 0x844   :  { %v1690_v62 = vmul.f32 2.0, %v1685_v61 }
 0x845   :  { %v3797_v63 = vpop.f32.mrf.mxu1 }
 0x846   :  { %v1692_v5 = vsub.f32 %v1690_v62, %v4651_v18  ;;  %v4167_v18 = vld [vmem:[#allocation7 + $0x164] ss:$8 sps:$4 sm:$0xff]   ;;  %v4186_v63 = vld [vmem:[#allocation8 + $0x2b8] sm:$0xff]  }
 0x848   :  { %v1693_v8 = vpack.c.bf16 %v1692_v5, %v1691_v3  ;;  %v4189_v3 = vld [vmem:[#allocation8 + $0x2a0] sm:$0xff]   ;;  %v4190_v5 = vld [vmem:[#allocation8 + $0x298] sm:$0xff]  }
 0x84a   :  { %3815 = vmatmul.mubr.bf16.vlgmr.msra.gmra.mxu1 %v1693_v8  ;;  %3819 = vmatpush3.bf16.msra.mxu0 %v1693_v8  ;;  %v4191_v8 = vld [vmem:[#allocation8 + $0x290] sm:$0xff]  }
 0x84b   :  { %3824 = vmatprep.subr.bf16.mxu0 %v4383_v0  ;;  %2100 = vmatprep.mubr.bf16.mxu1 %v4385_v29  ;;  %v4158_v29 = vld [vmem:[#allocation8 + $0x258] sm:$0xff]  }
 0x84c   :  { %2069 = vmatpush1.bf16.msra.mxu1 %v4162_v16  ;;  %v4195_v16 = vld [vmem:[#allocation8 + $0x2f0] sm:$0xff]  }
 0x84d   :  { %3821 = vmatmul.mubr.msk.bf16.vlgmr.msra.gmra.mxu0 %vm257_vm1, %v4572_v47  ;;  %2070 = vmatprep.subr.bf16.mxu1 %v4167_v18  ;;  %v4197_v18 = vld [vmem:[#allocation8 + $0x2e0] sm:$0xff]  }
 0x84e   :  { %3825 = vmatpush3.bf16.msra.mxu0 %v4154_v9  ;;  %3840 = vmatprep.mubr.msk.bf16.mxu0 %vm4384_vm0, %v4383_v0  ;;  %v4192_v9 = vld [vmem:[#allocation8 + $0x288] sm:$0xff]  }
 0x84f   :  { %3826 = vmatprep.subr.bf16.mxu0 %v4383_v0 }
 0x850   :  { %2071 = vmatpush1.bf16.msra.mxu1 %v4165_v19  ;;  %v4198_v19 = vld [vmem:[#allocation8 + $0x2d8] sm:$0xff]  }
 0x851   :  { %2072 = vmatprep.subr.bf16.mxu1 %v4170_v22  ;;  %v4199_v22 = vld [vmem:[#allocation8 + $0x2d0] sm:$0xff]  }
 0x852   :  { %3827 = vmatpush3.bf16.msra.mxu0 %v4155_v10  ;;  %v4193_v10 = vld [vmem:[#allocation8 + $0x280] sm:$0xff]  }
 0x853   :  { %3828 = vmatprep.subr.bf16.mxu0 %v4383_v0 }
 0x854   :  { %2073 = vmatpush1.bf16.msra.mxu1 %v4168_v23  ;;  %v4200_v23 = vld [vmem:[#allocation8 + $0x2c8] sm:$0xff]  }
 0x855   :  { %2074 = vmatprep.subr.bf16.mxu1 %v4173_v24  ;;  %v4201_v24 = vld [vmem:[#allocation8 + $0x2c0] sm:$0xff]  }
 0x856   :  { %3829 = vmatpush3.bf16.msra.mxu0 %v4156_v11 }
 0x857   :  { %3830 = vmatprep.subr.bf16.mxu0 %v4383_v0 }
 0x858   :  { %2075 = vmatpush1.bf16.msra.mxu1 %v4171_v25 }
 0x859   :  { %2076 = vmatprep.subr.bf16.mxu1 %v4176_v26 }
 0x85a   :  { %3831 = vmatpush3.bf16.msra.mxu0 %v4157_v12 }
 0x85b   :  { %3832 = vmatprep.subr.bf16.mxu0 %v4383_v0 }
 0x85c   :  { %2077 = vmatpush1.bf16.msra.mxu1 %v4174_v27 }
 0x85d   :  { %2078 = vmatprep.subr.bf16.mxu1 %v4179_v41  ;;  %v4203_v41 = vld [vmem:[#allocation8 + $0x330] sm:$0xff]  }
 0x85e   :  { %3833 = vmatpush3.bf16.msra.mxu0 %v4158_v29 }
 0x85f   :  { %3834 = vmatprep.subr.bf16.mxu0 %v4383_v0 }
 0x860   :  { %2079 = vmatpush1.bf16.msra.mxu1 %v4177_v2  ;;  %v4204_v2 = vld [vmem:[#allocation8 + $0x328] sm:$0xff]  }
 0x861   :  { %2080 = vmatprep.subr.bf16.mxu1 %v4182_v7  ;;  %v4205_v7 = vld [vmem:[#allocation8 + $0x320] sm:$0xff]  }
 0x862   :  { %3835 = vmatpush3.bf16.msra.mxu0 %v4159_v13 }
 0x863   :  { %3836 = vmatprep.subr.bf16.mxu0 %v4383_v0 }
 0x864   :  { %2081 = vmatpush1.bf16.msra.mxu1 %v4180_v44  ;;  %v4206_v44 = vld [vmem:[#allocation8 + $0x318] sm:$0xff]  }
 0x865   :  { %2082 = vmatprep.subr.bf16.mxu1 %v4185_v45  ;;  %v4207_v45 = vld [vmem:[#allocation8 + $0x310] sm:$0xff]  }
 0x866   :  { %3837 = vmatpush3.bf16.msra.mxu0 %v4160_v14 }
 0x867   :  { %3838 = vmatprep.subr.bf16.mxu0 %v4383_v0 }
 0x868   :  { %2083 = vmatpush1.bf16.msra.mxu1 %v4183_v46  ;;  %v4208_v46 = vld [vmem:[#allocation8 + $0x308] sm:$0xff]  }
 0x869   :  { %3870 = vmatprep.subr.bf16.mxu1 %v4383_v0 }
 0x86a   :  { %3839 = vmatpush3.bf16.msra.mxu0 %v4161_v15  ;;  %v4194_v15 = vld [vmem:[#allocation8 + $0x2f8] sm:$0xff]  }
 0x86b   :  { %3844 = vmatprep.subr.bf16.mxu0 %v4383_v0 }
 0x90a   :  { %v1793_v20 = vpop.f32.mrf.mxu1 }
 0x90b   :  { %v1800_v21 = vadd.f32 %v1793_v20, %v4692_v53  ;;  %v1188_v53 = vadd.f32 %v3268_v49, %v4643_v1  ;;  %v4187_v1 = vld [vmem:[#allocation8 + $0x2b0] sm:$0xff]  }
 0x90c   :  { %v3816_v4 = vpop.f32.mrf.mxu1 }
 0x90d   :  { %v1836_v28 = vpop.f32.mrf.mxu0 }
 0x90e   :  { %v1796_v30 = vpop.f32.mrf.mxu1  ;;  %v1843_v33 = vmul.f32 2.0, %v1836_v28 }
 0x90f   :  { %v1801_v31 = vadd.f32 %v1796_v30, %v4694_v57  ;;  %v3822_v32 = vpop.f32.mrf.mxu0 }
 0x910   :  { %v3817_v34 = vpop.f32.mrf.mxu1  ;;  %v1845_v38 = vsub.f32 %v1843_v33, %v4671_v42 }
 0x911   :  { %v1839_v35 = vpop.f32.mrf.mxu0 }
 0x912   :  { %v1844_v36 = vmul.f32 2.0, %v1839_v35 }
 0x913   :  { %v3823_v37 = vpop.f32.mrf.mxu0 }
 0x914   :  { %v1846_v39 = vsub.f32 %v1844_v36, %v4674_v43  ;;  %v3315_v43 = vld [vmem:[%s4882_s4 + $0x1] ss:$0 sm:$0xff] }
 0x916   :  { %v1847_v40 = vpack.c.bf16 %v1846_v39, %v1845_v38 }
 0x918   :  { %3841 = vmatmul.mubr.bf16.vlgmr.msra.gmra.mxu0 %v1847_v40  ;;  %v4202_v40 = vld [vmem:[#allocation8 + $0x338] sm:$0xff]  }
 0x919   :  { %3846 = vmatprep.mubr.msk.bf16.mxu0 %vm4384_vm0, %v4383_v0 }
 0x9d8   :  { %v1947_v42 = vpop.f32.mrf.mxu0 }
 0x9d9   :  { %v1954_v48 = vadd.f32 %v1947_v42, %v1800_v21  ;;  %v4209_v42 = vld [vmem:[#allocation8 + $0x300] sm:$0xff]  }
 0x9da   :  { %v3842_v50 = vpop.f32.mrf.mxu0 }
 0x9db   :  { %v1964_v51 = vadd.f32 %v3315_v43, %v1954_v48 }
 0x9dc   :  { %v1950_v52 = vpop.f32.mrf.mxu0 }
 0x9dd   :  { %v1966_v54 = vmax.f32 %v1964_v51, 0.0  ;;  %v1955_v55 = vadd.f32 %v1950_v52, %v1801_v31 }
 0x9de   :  { %v3843_v56 = vpop.f32.mrf.mxu0 }
 0x9df   :  { %v4726_v57 = vadd.f32 %v1966_v54, %v1188_v53  ;;  %v1965_v58 = vadd.f32 %v3315_v43, %v1955_v55 }
 0x9e1   :  { %v1967_v60 = vmax.f32 %v1965_v58, 0.0 }
 0x9e3   :  { %v4729_v61 = vadd.f32 %v1967_v60, %v1189_v59 }
 0x9e5   :  { %v1970_v62 = vpack.c.bf16 %v4729_v61, %v4726_v57 }
 0x9e7   :  { %2101 = vmatmul.mubr.bf16.vlgmr.msra.gmra.mxu1 %v1970_v62  ;;  %3845 = vmatpush3.bf16.msra.mxu0 %v1970_v62 }
 0x9e8   :  { %3850 = vmatprep.subr.bf16.mxu0 %v4383_v0  ;;  %3872 = vmatprep.mubr.msk.bf16.mxu1 %vm4384_vm0, %v4383_v0 }
 0x9ea   :  { %3847 = vmatmul.mubr.msk.bf16.vlgmr.msra.gmra.mxu0 %vm257_vm1, %v4572_v47 }
 0x9eb   :  { %3851 = vmatpush3.bf16.msra.mxu0 %v4186_v63  ;;  %3866 = vmatprep.mubr.msk.bf16.mxu0 %vm4384_vm0, %v4383_v0 }
 0x9ec   :  { %3852 = vmatprep.subr.bf16.mxu0 %v4383_v0 }
 0x9ef   :  { %3853 = vmatpush3.bf16.msra.mxu0 %v4187_v1  ;;  %v4210_v1 = vld [vmem:[#allocation8 + $0x378] sm:$0xff]  }
 0x9f0   :  { %3854 = vmatprep.subr.bf16.mxu0 %v4383_v0 }
 0x9f3   :  { %3855 = vmatpush3.bf16.msra.mxu0 %v4188_v6  ;;  %v4211_v6 = vld [vmem:[#allocation8 + $0x370] sm:$0xff]  }
 0x9f4   :  { %3856 = vmatprep.subr.bf16.mxu0 %v4383_v0 }
 0x9f7   :  { %3857 = vmatpush3.bf16.msra.mxu0 %v4189_v3  ;;  %v4212_v3 = vld [vmem:[#allocation8 + $0x368] sm:$0xff]  }
 0x9f8   :  { %3858 = vmatprep.subr.bf16.mxu0 %v4383_v0 }
 0x9fb   :  { %3859 = vmatpush3.bf16.msra.mxu0 %v4190_v5  ;;  %v4213_v5 = vld [vmem:[#allocation8 + $0x360] sm:$0xff]  }
 0x9fc   :  { %3860 = vmatprep.subr.bf16.mxu0 %v4383_v0 }
 0x9ff   :  { %3861 = vmatpush3.bf16.msra.mxu0 %v4191_v8  ;;  %v4214_v8 = vld [vmem:[#allocation8 + $0x358] sm:$0xff]  }
 0xa00   :  { %3862 = vmatprep.subr.bf16.mxu0 %v4383_v0 }
 0xa03   :  { %3863 = vmatpush3.bf16.msra.mxu0 %v4192_v9  ;;  %v4216_v9 = vld [vmem:[#allocation8 + $0x348] sm:$0xff]  }
 0xa04   :  { %3864 = vmatprep.subr.bf16.mxu0 %v4383_v0 }
 0xa07   :  { %3865 = vmatpush3.bf16.msra.mxu0 %v4193_v10  ;;  %v4217_v10 = vld [vmem:[#allocation8 + $0x340] sm:$0xff]  }
 0xa08   :  { %3896 = vmatprep.subr.bf16.mxu0 %v4383_v0 }
 0xaa7   :  { %v2102_v25 = vpop.f32.mrf.mxu1 }
 0xaa9   :  { %v4769_v26 = vpop.f32.mrf.mxu1 }
 0xaaa   :  { %v4748_v11 = vpop.f32.mrf.mxu0 }
 0xaab   :  { %v2106_v27 = vpop.f32.mrf.mxu1 }
 0xaac   :  { %v3848_v12 = vpop.f32.mrf.mxu0 }
 0xaad   :  { %v4771_v21 = vpop.f32.mrf.mxu1 }
 0xaae   :  { %v4750_v29 = vpop.f32.mrf.mxu0 }
 0xaaf   :  { %v2162_v13 = vpack.c.bf16 %v4750_v29, %v4748_v11 }
 0xab0   :  { %v3849_v14 = vpop.f32.mrf.mxu0 }
 0xab1   :  { %3867 = vmatmul.mubr.bf16.vlgmr.msra.gmra.mxu0 %v2162_v13  ;;  %3871 = vmatpush3.bf16.msra.mxu1 %v2162_v13 }
 0xab2   :  { %3876 = vmatprep.subr.bf16.mxu1 %v4383_v0  ;;  %3898 = vmatprep.mubr.msk.bf16.mxu0 %vm4384_vm0, %v4383_v0 }
 0xab4   :  { %3873 = vmatmul.mubr.msk.bf16.vlgmr.msra.gmra.mxu1 %vm257_vm1, %v4572_v47 }
 0xab5   :  { %3877 = vmatpush3.bf16.msra.mxu1 %v4194_v15  ;;  %3892 = vmatprep.mubr.msk.bf16.mxu1 %vm4384_vm0, %v4383_v0 }
 0xab6   :  { %3878 = vmatprep.subr.bf16.mxu1 %v4383_v0 }
 0xab9   :  { %3879 = vmatpush3.bf16.msra.mxu1 %v4195_v16 }
 0xaba   :  { %3880 = vmatprep.subr.bf16.mxu1 %v4383_v0 }
 0xabd   :  { %3881 = vmatpush3.bf16.msra.mxu1 %v4196_v17 }
 0xabe   :  { %3882 = vmatprep.subr.bf16.mxu1 %v4383_v0 }
 0xac1   :  { %3883 = vmatpush3.bf16.msra.mxu1 %v4197_v18 }
 0xac2   :  { %3884 = vmatprep.subr.bf16.mxu1 %v4383_v0 }
 0xac5   :  { %3885 = vmatpush3.bf16.msra.mxu1 %v4198_v19 }
 0xac6   :  { %3886 = vmatprep.subr.bf16.mxu1 %v4383_v0 }
 0xac9   :  { %3887 = vmatpush3.bf16.msra.mxu1 %v4199_v22 }
 0xaca   :  { %3888 = vmatprep.subr.bf16.mxu1 %v4383_v0 }
 0xacd   :  { %3889 = vmatpush3.bf16.msra.mxu1 %v4200_v23 }
 0xace   :  { %3890 = vmatprep.subr.bf16.mxu1 %v4383_v0 }
 0xad1   :  { %3891 = vmatpush3.bf16.msra.mxu1 %v4201_v24 }
 0xad2   :  { %3922 = vmatprep.subr.bf16.mxu1 %v4383_v0 }
 0xb71   :  { %v2262_v20 = vpop.f32.mrf.mxu0 }
 0xb72   :  { %v2269_v43 = vadd.f32 %v2262_v20, %v2102_v25  ;;  %v4218_v20 = vld [vmem:[#allocation8 + $0x3b8] sm:$0xff]  }
 0xb73   :  { %v3868_v4 = vpop.f32.mrf.mxu0 }
 0xb74   :  { %v2305_v28 = vpop.f32.mrf.mxu1  ;;  %v4824_v4 = vld [vmem:[#allocation2] sm:$0xff]  }
 0xb75   :  { %v2265_v30 = vpop.f32.mrf.mxu0  ;;  %v2312_v32 = vmul.f32 2.0, %v2305_v28  ;;  %v4219_v28 = vld [vmem:[#allocation8 + $0x3b0] sm:$0xff]  }
 0xb76   :  { %v3874_v31 = vpop.f32.mrf.mxu1  ;;  %v2270_v51 = vadd.f32 %v2265_v30, %v2106_v27  ;;  %v4220_v30 = vld [vmem:[#allocation8 + $0x3a8] sm:$0xff]  }
 0xb77   :  { %v3869_v33 = vpop.f32.mrf.mxu0  ;;  %v4774_v37 = vsub.f32 %v2312_v32, %v4726_v57  ;;  %v4221_v31 = vld [vmem:[#allocation8 + $0x3a0] sm:$0xff]   ;;  %v4222_v32 = vld [vmem:[#allocation8 + $0x398] sm:$0xff]  }
 0xb78   :  { %v2308_v34 = vpop.f32.mrf.mxu1  ;;  %v4223_v33 = vld [vmem:[#allocation8 + $0x390] sm:$0xff]  }
 0xb79   :  { %v2313_v35 = vmul.f32 2.0, %v2308_v34  ;;  %v4224_v34 = vld [vmem:[#allocation8 + $0x388] sm:$0xff]  }
 0xb7a   :  { %v3875_v36 = vpop.f32.mrf.mxu1 }
 0xb7b   :  { %v4777_v38 = vsub.f32 %v2313_v35, %v4729_v61  ;;  %v4225_v35 = vld [vmem:[#allocation8 + $0x380] sm:$0xff]  }
 0xb7d   :  { %v2316_v39 = vpack.c.bf16 %v4777_v38, %v4774_v37 }
 0xb7f   :  { %3893 = vmatmul.mubr.bf16.vlgmr.msra.gmra.mxu1 %v2316_v39  ;;  %3897 = vmatpush3.bf16.msra.mxu0 %v2316_v39 }
 0xb80   :  { %3902 = vmatprep.subr.bf16.mxu0 %v4383_v0  ;;  %3924 = vmatprep.mubr.msk.bf16.mxu1 %vm4384_vm0, %v4383_v0 }
 0xb82   :  { %3899 = vmatmul.mubr.msk.bf16.vlgmr.msra.gmra.mxu0 %vm257_vm1, %v4572_v47 }
 0xb83   :  { %3903 = vmatpush3.bf16.msra.mxu0 %v4202_v40  ;;  %3918 = vmatprep.mubr.msk.bf16.mxu0 %vm4384_vm0, %v4383_v0 }
 0xb84   :  { %3904 = vmatprep.subr.bf16.mxu0 %v4383_v0 }
 0xb87   :  { %3905 = vmatpush3.bf16.msra.mxu0 %v4203_v41 }
 0xb88   :  { %3906 = vmatprep.subr.bf16.mxu0 %v4383_v0 }
 0xb8b   :  { %3907 = vmatpush3.bf16.msra.mxu0 %v4204_v2 }
 0xb8c   :  { %3908 = vmatprep.subr.bf16.mxu0 %v4383_v0 }
 0xb8f   :  { %3909 = vmatpush3.bf16.msra.mxu0 %v4205_v7 }
 0xb90   :  { %3910 = vmatprep.subr.bf16.mxu0 %v4383_v0 }
 0xb93   :  { %3911 = vmatpush3.bf16.msra.mxu0 %v4206_v44 }
 0xb94   :  { %3912 = vmatprep.subr.bf16.mxu0 %v4383_v0 }
 0xb97   :  { %3913 = vmatpush3.bf16.msra.mxu0 %v4207_v45 }
 0xb98   :  { %3914 = vmatprep.subr.bf16.mxu0 %v4383_v0 }
 0xb9b   :  { %3915 = vmatpush3.bf16.msra.mxu0 %v4208_v46 }
 0xb9c   :  { %3916 = vmatprep.subr.bf16.mxu0 %v4383_v0 }
 0xb9f   :  { %3917 = vmatpush3.bf16.msra.mxu0 %v4209_v42 }
 0xba0   :  { %3948 = vmatprep.subr.bf16.mxu0 %v4383_v0 }
 0xc3f   :  { %v2416_v48 = vpop.f32.mrf.mxu1 }
 0xc40   :  { %v2423_v49 = vadd.f32 %v2416_v48, %v2269_v43 }
 0xc41   :  { %v3894_v50 = vpop.f32.mrf.mxu1 }
 0xc42   :  { %v2459_v52 = vpop.f32.mrf.mxu0 }
 0xc43   :  { %v2419_v53 = vpop.f32.mrf.mxu1  ;;  %v2466_v56 = vmul.f32 2.0, %v2459_v52  ;;  %v4228_v52 = vld [vmem:[#allocation10 + $0x28] sm:$0xff]  }
 0xc44   :  { %v2424_v54 = vadd.f32 %v2419_v53, %v2270_v51  ;;  %v3900_v55 = vpop.f32.mrf.mxu0  ;;  %v4227_v51 = vld [vmem:[#allocation10 + $0x30] sm:$0xff]   ;;  %v4229_v53 = vld [vmem:[#allocation10 + $0x20] sm:$0xff]  }
 0xc45   :  { %v3895_v57 = vpop.f32.mrf.mxu1  ;;  %v4797_v61 = vsub.f32 %v2466_v56, %v4748_v11  ;;  %v4231_v55 = vld [vmem:[#allocation10 + $0x10] sm:$0xff]   ;;  %v4232_v56 = vld [vmem:[#allocation10 + $0x8] sm:$0xff]  }
 0xc46   :  { %v2462_v58 = vpop.f32.mrf.mxu0  ;;  %v4233_v57 = vld [vmem:[#allocation10] sm:$0xff]  }
 0xc47   :  { %v2467_v59 = vmul.f32 2.0, %v2462_v58 }
 0xc48   :  { %v3901_v60 = vpop.f32.mrf.mxu0 }
 0xc49   :  { %v4800_v62 = vsub.f32 %v2467_v59, %v4750_v29  ;;  %v3380_v59 = vld [vmem:[%s4882_s4 + $0x2] ss:$0 sm:$0xff] }
 0xc4b   :  { %v2470_v63 = vpack.c.bf16 %v4800_v62, %v4797_v61 }
 0xc4d   :  { %3919 = vmatmul.mubr.bf16.vlgmr.msra.gmra.mxu0 %v2470_v63  ;;  %3923 = vmatpush3.bf16.msra.mxu1 %v2470_v63 }
 0xc4e   :  { %3928 = vmatprep.subr.bf16.mxu1 %v4383_v0  ;;  %3950 = vmatprep.mubr.msk.bf16.mxu0 %vm4384_vm0, %v4383_v0 }
 0xc50   :  { %3925 = vmatmul.mubr.msk.bf16.vlgmr.msra.gmra.mxu1 %vm257_vm1, %v4572_v47  ;;  %v4215_v47 = vld [vmem:[#allocation8 + $0x350] sm:$0xff]  }
 0xc51   :  { %3929 = vmatpush3.bf16.msra.mxu1 %v4210_v1  ;;  %3944 = vmatprep.mubr.msk.bf16.mxu1 %vm4384_vm0, %v4383_v0 }
 0xc52   :  { %3930 = vmatprep.subr.bf16.mxu1 %v4383_v0 }
 0xc55   :  { %3931 = vmatpush3.bf16.msra.mxu1 %v4211_v6 }
 0xc56   :  { %3932 = vmatprep.subr.bf16.mxu1 %v4383_v0 }
 0xc59   :  { %3933 = vmatpush3.bf16.msra.mxu1 %v4212_v3 }
 0xc5a   :  { %3934 = vmatprep.subr.bf16.mxu1 %v4383_v0 }
 0xc5d   :  { %3935 = vmatpush3.bf16.msra.mxu1 %v4213_v5 }
 0xc5e   :  { %3936 = vmatprep.subr.bf16.mxu1 %v4383_v0 }
 0xc61   :  { %3937 = vmatpush3.bf16.msra.mxu1 %v4214_v8 }
 0xc62   :  { %3938 = vmatprep.subr.bf16.mxu1 %v4383_v0 }
 0xc65   :  { %3939 = vmatpush3.bf16.msra.mxu1 %v4215_v47 }
 0xc66   :  { %3940 = vmatprep.subr.bf16.mxu1 %v4383_v0 }
 0xc69   :  { %3941 = vmatpush3.bf16.msra.mxu1 %v4216_v9 }
 0xc6a   :  { %3942 = vmatprep.subr.bf16.mxu1 %v4383_v0 }
 0xc6d   :  { %3943 = vmatpush3.bf16.msra.mxu1 %v4217_v10 }
 0xc6e   :  { %3974 = vmatprep.subr.bf16.mxu1 %v4383_v0 }
 0xd0d   :  { %v2570_v11 = vpop.f32.mrf.mxu0 }
 0xd0e   :  { %v2577_v12 = vadd.f32 %v2570_v11, %v2423_v49  ;;  %v4226_v49 = vld [vmem:[#allocation10 + $0x38] sm:$0xff]  }
 0xd0f   :  { %v3920_v29 = vpop.f32.mrf.mxu0 }
 0xd10   :  { %v2613_v13 = vpop.f32.mrf.mxu1  ;;  %v4244_v29 = vld [vmem:[#allocation5] sm:$0xff] }
 0xd11   :  { %v2573_v14 = vpop.f32.mrf.mxu0  ;;  %v2620_v17 = vmul.f32 2.0, %v2613_v13 }
 0xd12   :  { %v2578_v15 = vadd.f32 %v2573_v14, %v2424_v54  ;;  %v3926_v16 = vpop.f32.mrf.mxu1  ;;  %v4230_v54 = vld [vmem:[#allocation10 + $0x18] sm:$0xff]  }
 0xd13   :  { %v3921_v18 = vpop.f32.mrf.mxu0  ;;  %v2622_v24 = vsub.f32 %v2620_v17, %v4774_v37  ;;  %v4245_v14 = vld [vmem:[#allocation5 + $0x8] sm:$0xff] }
 0xd14   :  { %v2616_v19 = vpop.f32.mrf.mxu1  ;;  %v4234_v17 = vld [vmem:[#allocation10 + $0x78] sm:$0xff]   ;;  %v4237_v18 = vld [vmem:[#allocation10 + $0x60] sm:$0xff]  }
 0xd15   :  { %v2621_v22 = vmul.f32 2.0, %v2616_v19  ;;  %v4238_v19 = vld [vmem:[#allocation10 + $0x58] sm:$0xff]  }
 0xd16   :  { %v3927_v23 = vpop.f32.mrf.mxu1 }
 0xd17   :  { %v2623_v25 = vsub.f32 %v2621_v22, %v4777_v38  ;;  %v4239_v22 = vld [vmem:[#allocation10 + $0x50] sm:$0xff]   ;;  %v4240_v23 = vld [vmem:[#allocation10 + $0x48] sm:$0xff]  }
 0xd19   :  { %v2624_v27 = vpack.c.bf16 %v2623_v25, %v2622_v24  ;;  %v4241_v24 = vld [vmem:[#allocation10 + $0x40] sm:$0xff]  }
 0xd1b   :  { %3945 = vmatmul.mubr.bf16.vlgmr.msra.gmra.mxu1 %v2624_v27  ;;  %3949 = vmatpush3.bf16.msra.mxu0 %v2624_v27 }
 0xd1c   :  { %3954 = vmatprep.subr.bf16.mxu0 %v4383_v0  ;;  %3976 = vmatprep.mubr.msk.bf16.mxu1 %vm4384_vm0, %v4383_v0 }
 0xd1e   :  { %3951 = vmatmul.mubr.msk.bf16.vlgmr.msra.gmra.mxu0 %vm257_vm1, %v4824_v4 }
 0xd1f   :  { %3955 = vmatpush3.bf16.msra.mxu0 %v4218_v20  ;;  %3970 = vmatprep.mubr.msk.bf16.mxu0 %vm4384_vm0, %v4383_v0 }
 0xd20   :  { %3956 = vmatprep.subr.bf16.mxu0 %v4383_v0 }
 0xd23   :  { %3957 = vmatpush3.bf16.msra.mxu0 %v4219_v28 }
 0xd24   :  { %3958 = vmatprep.subr.bf16.mxu0 %v4383_v0 }
 0xd27   :  { %3959 = vmatpush3.bf16.msra.mxu0 %v4220_v30 }
 0xd28   :  { %3960 = vmatprep.subr.bf16.mxu0 %v4383_v0 }
 0xd2b   :  { %3961 = vmatpush3.bf16.msra.mxu0 %v4221_v31 }
 0xd2c   :  { %3962 = vmatprep.subr.bf16.mxu0 %v4383_v0 }
 0xd2f   :  { %3963 = vmatpush3.bf16.msra.mxu0 %v4222_v32 }
 0xd30   :  { %3964 = vmatprep.subr.bf16.mxu0 %v4383_v0 }
 0xd33   :  { %3965 = vmatpush3.bf16.msra.mxu0 %v4223_v33 }
 0xd34   :  { %3966 = vmatprep.subr.bf16.mxu0 %v4383_v0 }
 0xd37   :  { %3967 = vmatpush3.bf16.msra.mxu0 %v4224_v34 }
 0xd38   :  { %3968 = vmatprep.subr.bf16.mxu0 %v4383_v0 }
 0xd3b   :  { %3969 = vmatpush3.bf16.msra.mxu0 %v4225_v35  ;;  %v3398_v35 = vld [vmem:[%s4885_s7] ss:$0 sm:$0xff] }
 0xd3c   :  { %4000 = vmatprep.subr.bf16.mxu0 %v4383_v0 }
 0xddb   :  { %v2724_v36 = vpop.f32.mrf.mxu1 }
 0xddc   :  { %v2731_v37 = vadd.f32 %v2724_v36, %v2577_v12 }
 0xddd   :  { %v3946_v38 = vpop.f32.mrf.mxu1 }
 0xdde   :  { %v2767_v39 = vpop.f32.mrf.mxu0 }
 0xddf   :  { %v2727_v40 = vpop.f32.mrf.mxu1  ;;  %v2774_v7 = vmul.f32 2.0, %v2767_v39 }
 0xde0   :  { %v2732_v41 = vadd.f32 %v2727_v40, %v2578_v15  ;;  %v3952_v2 = vpop.f32.mrf.mxu0 }
 0xde1   :  { %v3947_v44 = vpop.f32.mrf.mxu1  ;;  %v2776_v43 = vsub.f32 %v2774_v7, %v4797_v61  ;;  %v3333_v61 = vld [vmem:[%s4883_s5 + $0x2] ss:$0 sm:$0xff] }
 0xde2   :  { %v2770_v45 = vpop.f32.mrf.mxu0  ;;  %v2119_v6 = vadd.f32 %v3333_v61, %v4769_v26  ;;  %v2120_v10 = vadd.f32 %v3333_v61, %v4771_v21  ;;  %v4235_v26 = vld [vmem:[#allocation10 + $0x70] sm:$0xff]   ;;  %v4236_v21 = vld [vmem:[#allocation10 + $0x68] sm:$0xff]  }
 0xde3   :  { %v2775_v46 = vmul.f32 2.0, %v2770_v45 }
 0xde4   :  { %v3953_v42 = vpop.f32.mrf.mxu0 }
 0xde5   :  { %v2777_v48 = vsub.f32 %v2775_v46, %v4800_v62 }
 0xde7   :  { %v2778_v50 = vpack.c.bf16 %v2777_v48, %v2776_v43 }
 0xde9   :  { %3971 = vmatmul.mubr.bf16.vlgmr.msra.gmra.mxu0 %v2778_v50 }
 0xdea   :  { %4001 = vmatpush3.bf16.msra.mxu0 %v4226_v49  ;;  %4016 = vmatprep.mubr.msk.bf16.mxu0 %vm4384_vm0, %v4383_v0 }
 0xdeb   :  { %4002 = vmatprep.subr.bf16.mxu0 %v4383_v0 }
 0xdee   :  { %4003 = vmatpush3.bf16.msra.mxu0 %v4227_v51 }
 0xdef   :  { %4004 = vmatprep.subr.bf16.mxu0 %v4383_v0 }
 0xdf2   :  { %4005 = vmatpush3.bf16.msra.mxu0 %v4228_v52 }
 0xdf3   :  { %4006 = vmatprep.subr.bf16.mxu0 %v4383_v0 }
 0xdf6   :  { %4007 = vmatpush3.bf16.msra.mxu0 %v4229_v53 }
 0xdf7   :  { %4008 = vmatprep.subr.bf16.mxu0 %v4383_v0 }
 0xdfa   :  { %4009 = vmatpush3.bf16.msra.mxu0 %v4230_v54 }
 0xdfb   :  { %4010 = vmatprep.subr.bf16.mxu0 %v4383_v0 }
 0xdfe   :  { %4011 = vmatpush3.bf16.msra.mxu0 %v4231_v55 }
 0xdff   :  { %4012 = vmatprep.subr.bf16.mxu0 %v4383_v0 }
 0xe02   :  { %4013 = vmatpush3.bf16.msra.mxu0 %v4232_v56 }
 0xe03   :  { %4014 = vmatprep.subr.bf16.mxu0 %v4383_v0 }
 0xe06   :  { %4015 = vmatpush3.bf16.msra.mxu0 %v4233_v57 }
 0xea9   :  { %v2878_v58 = vpop.f32.mrf.mxu0 }
 0xeaa   :  { %v2885_v60 = vadd.f32 %v2878_v58, %v2731_v37 }
 0xeab   :  { %v3972_v62 = vpop.f32.mrf.mxu0 }
 0xeac   :  { %v2895_v63 = vadd.f32 %v3380_v59, %v2885_v60 }
 0xead   :  { %v2881_v1 = vpop.f32.mrf.mxu0 }
 0xeae   :  { %v2897_v3 = vmax.f32 %v2895_v63, 0.0  ;;  %v2886_v5 = vadd.f32 %v2881_v1, %v2732_v41 }
 0xeaf   :  { %v3973_v8 = vpop.f32.mrf.mxu0 }
 0xeb0   :  { %v2899_v47 = vadd.f32 %v2897_v3, %v2119_v6  ;;  %v2896_v9 = vadd.f32 %v3380_v59, %v2886_v5 }
 0xeb2   :  { %v2898_v11 = vmax.f32 %v2896_v9, 0.0  ;;  %v2901_v13 = vadd.f32 %v4244_v29, %v2899_v47 }
 0xeb4   :  { %v2900_v12 = vadd.f32 %v2898_v11, %v2120_v10 }
 0xeb6   :  { %v2902_v15 = vadd.f32 %v4245_v14, %v2900_v12 }
 0xeb8   :  { %v2903_v16 = vpack.c.bf16 %v2902_v15, %v2901_v13 }
 0xeba   :  { %3975 = vmatpush3.bf16.msra.mxu1 %v2903_v16  ;;  %4017 = vmatmul.mubr.bf16.vlgmr.msra.gmra.mxu0 %v2903_v16 }
 0xebb   :  { %3980 = vmatprep.subr.bf16.mxu1 %v4383_v0 }
 0xebd   :  { %3977 = vmatmul.mubr.msk.bf16.vlgmr.msra.gmra.mxu1 %vm257_vm1, %v4824_v4 }
 0xebe   :  { %3981 = vmatpush3.bf16.msra.mxu1 %v4234_v17  ;;  %3996 = vmatprep.mubr.msk.bf16.mxu1 %vm4384_vm0, %v4383_v0 }
 0xebf   :  { %3982 = vmatprep.subr.bf16.mxu1 %v4383_v0 }
 0xec2   :  { %3983 = vmatpush3.bf16.msra.mxu1 %v4235_v26 }
 0xec3   :  { %3984 = vmatprep.subr.bf16.mxu1 %v4383_v0 }
 0xec6   :  { %3985 = vmatpush3.bf16.msra.mxu1 %v4236_v21 }
 0xec7   :  { %3986 = vmatprep.subr.bf16.mxu1 %v4383_v0 }
 0xeca   :  { %3987 = vmatpush3.bf16.msra.mxu1 %v4237_v18 }
 0xecb   :  { %3988 = vmatprep.subr.bf16.mxu1 %v4383_v0 }
 0xece   :  { %3989 = vmatpush3.bf16.msra.mxu1 %v4238_v19 }
 0xecf   :  { %3990 = vmatprep.subr.bf16.mxu1 %v4383_v0 }
 0xed2   :  { %3991 = vmatpush3.bf16.msra.mxu1 %v4239_v22 }
 0xed3   :  { %3992 = vmatprep.subr.bf16.mxu1 %v4383_v0 }
 0xed6   :  { %3993 = vmatpush3.bf16.msra.mxu1 %v4240_v23 }
 0xed7   :  { %3994 = vmatprep.subr.bf16.mxu1 %v4383_v0 }
 0xeda   :  { %3995 = vmatpush3.bf16.msra.mxu1 %v4241_v24 }
 0xf7a   :  { %v3150_v25 = vpop.f32.mrf.mxu0 }
 0xf7c   :  { %v4018_v27 = vpop.f32.mrf.mxu0 }
 0xf7d   :  { %v2954_v20 = vpop.f32.mrf.mxu1 }
 0xf7e   :  { %v3153_v4 = vpop.f32.mrf.mxu0 }
 0xf7f   :  { %v3978_v28 = vpop.f32.mrf.mxu1 }
 0xf80   :  { %v4019_v30 = vpop.f32.mrf.mxu0 }
 0xf81   :  { %v2957_v31 = vpop.f32.mrf.mxu1 }
 0xf82   :  { %v2961_v32 = vpack.c.bf16 %v2957_v31, %v2954_v20 }
 0xf83   :  { %v3979_v33 = vpop.f32.mrf.mxu1 }
 0xf84   :  { %3997 = vmatmul.mubr.bf16.vlgmr.msra.gmra.mxu1 %v2961_v32 }
0x1044   :  { %v3061_v34 = vpop.f32.mrf.mxu1 }
0x1045   :  { %v3151_v36 = vadd.f32 %v3150_v25, %v3061_v34 }
0x1046   :  { %v3998_v37 = vpop.f32.mrf.mxu1 }
0x1047   :  { %v3164_v0 = vadd.f32 %v3398_v35, %v3151_v36 }
0x1048   :  { %v3064_v38 = vpop.f32.mrf.mxu1 }
0x1049   :  { %3166 = vst [vmem:[#allocation11] sm:$0xff] %v3164_v0  ;;  %v3154_v39 = vadd.f32 %v3153_v4, %v3064_v38 }
0x104a   :  { %v3999_v40 = vpop.f32.mrf.mxu1 }
0x104b   :  { %v3165_v41 = vadd.f32 %v3398_v35, %v3154_v39 }
0x104d   :  { %3167 = vst [vmem:[#allocation11 + $0x8] sm:$0xff] %v3165_v41 }
0x104e   :  { %4357 = shalt.err (!%p4354_p1)
}
0x104f   :  { %3179 = dma.vmem_to_hbm [thread:$0]  %s3174_s21, 256, %s4886_s8, [#allocation4], %s4375_s30, %s4375_s30, %s4376_s9  }
0x1050   :  { %4372 = dma.done.wait [#allocation4], 256  }
0x1051   :  { %4373 = vsyncadd [#allocation4], 4294967040 }
0x1052   :  { %3183 = vsyncpa [#allocation3], 1 }
0x1053   :  { %3184 = vsyncpa [#allocation6], 1 }
0x1054   :  { %3185 = vsyncpa [#allocation9], 1 }
0x1055   :  { %3186 = vsyncpa [#allocation4], 1 }

</bundles_post_ra>
